<compile_context>
chip_gen: v6e
topology: v6e:2x2x1
jax: 0.10.0
libtpu: 0.0.40
codegen_flags: <defaults>
</compile_context>

<pallas_src>
import math
import jax
import jax.numpy as jnp
from jax import lax
from jax.experimental import pallas as pl
from jax.experimental.pallas import tpu as pltpu

MET = 16            # "meteorological" feature dim (chosen small / lane friendly)
EMBED = 64          # embed_size (module default)
HEADS = 8           # heads (module default)
HEAD_DIM = EMBED // HEADS
SEQ = 20            # forced by Encoder.fc_out = Linear(20*embed_size, met)
FFN = 4 * EMBED     # forward_expansion * embed_size
BATCH = 2


def transformer_kernel(x_ref, pe_ref,
                       w_emb_ref, wq_ref, wkv_ref, bkv_ref, b3_ref,
                       wo_ref, w1_ref, b1_ref, w2_ref,
                       wfc_ref, bfc_ref,
                       o_ref):
    # One grid step == one batch element.
    x = x_ref[0].astype(jnp.bfloat16)                                   # (S, MET)

    # word embedding + positional encoding (embedding bias folded into pe_ref)
    h = jnp.dot(x, w_emb_ref[...], preferred_element_type=jnp.float32) + pe_ref[...]
    h_bf = h.astype(jnp.bfloat16)                                       # (S, D)

    bq = b3_ref[0:1, :]                                                 # (1, D)
    bo = b3_ref[1:2, :]
    b2 = b3_ref[2:3, :]

    # ---- self attention (mask=None) ----
    # Q stays row-major; K and V are produced directly in transposed layout (2D, S)
    # with a single fused matmul, so per-head slices are whole sublane tiles.
    q = jnp.dot(h_bf, wq_ref[...], preferred_element_type=jnp.float32) + bq        # (S, D)
    kvT = lax.dot_general(wkv_ref[...], h_bf, (((1,), (1,)), ((), ())),
                          preferred_element_type=jnp.float32) + bkv_ref[...]       # (2D, S)
    kT = kvT[0:EMBED, :]                                                # (D, S)
    vT = kvT[EMBED:2 * EMBED, :]                                        # (D, S)

    scale = 1.0 / math.sqrt(HEAD_DIM)
    attn = jnp.zeros((SEQ, EMBED), jnp.float32)
    for hd in range(HEADS):                         # static unrolled loop over heads
        lo, hi = hd * HEAD_DIM, (hd + 1) * HEAD_DIM
        qh = q[:, lo:hi]                                                # (S, Hd)
        khT = kT[lo:hi, :]                                              # (Hd, S) aligned
        vhT = vT[lo:hi, :]                                              # (Hd, S) aligned
        energy = jnp.dot(qh, khT, preferred_element_type=jnp.float32) * scale      # (S, S)
        energy = energy - jnp.max(energy, axis=-1, keepdims=True)
        p = jnp.exp(energy)
        inv = pl.reciprocal(jnp.sum(p, axis=-1, keepdims=True), approx=True)
        att = p * inv
        # head_out = att @ vh, with vh = vhT.T handled inside the matmul (trans_b)
        head_out = lax.dot_general(att, vhT, (((1,), (1,)), ((), ())),
                                   preferred_element_type=jnp.float32)             # (S, Hd)
        # fold the per-head slice of fc_out directly into the accumulation
        attn = attn + jnp.dot(head_out, wo_ref[lo:hi, :],
                              preferred_element_type=jnp.float32)
    attn = attn + bo

    xres = attn + h                                                     # residual (dropout = id)

    # ---- feed forward ----
    ff = jnp.dot(xres.astype(jnp.bfloat16), w1_ref[...],
                 preferred_element_type=jnp.float32) + b1_ref[...]
    ff = jnp.maximum(ff, 0.0)
    ff = jnp.dot(ff.astype(jnp.bfloat16), w2_ref[...],
                 preferred_element_type=jnp.float32) + b2
    out = ff + xres                                                     # (S, D)

    # ---- final projection over flattened (S*D) ----
    # flatten(out) @ wfc_flat  ==  sum_{s,d} out[s,d] * wfc_t[m,s,d]
    # Pure-VPU contraction; wfc_t is pre-transposed to (MET, S, D) in the wrapper so
    # both reductions are natural minor-dim (lane, then sublane) keepdims reductions.
    prod = out[None, :, :] * wfc_ref[...]                               # (MET, S, D)
    red = jnp.sum(prod, axis=2, keepdims=True)                          # (MET, S, 1)
    red = jnp.sum(red, axis=1, keepdims=True)                           # (MET, 1, 1)
    o_ref[0] = red + bfc_ref[...]                                       # block (1, MET, 1, 1)


def positional_encoding(max_len, d_model):
    position = jnp.arange(max_len, dtype=jnp.float32)[:, None]
    div_term = jnp.exp(jnp.arange(0, d_model, 2, dtype=jnp.float32)
                       * -(math.log(10000.0) / d_model))
    pe = jnp.zeros((max_len, d_model), jnp.float32)
    pe = pe.at[:, 0::2].set(jnp.sin(position * div_term))
    pe = pe.at[:, 1::2].set(jnp.cos(position * div_term))
    return pe


def make_params(key):
    """f32 parameters (PyTorch nn.Linear init), weights stored as (in, out)."""
    def lin(k, fan_in, fan_out):
        kw, kb = jax.random.split(k)
        bound = 1.0 / math.sqrt(fan_in)
        w = jax.random.uniform(kw, (fan_in, fan_out), jnp.float32, -bound, bound)
        b = jax.random.uniform(kb, (1, fan_out), jnp.float32, -bound, bound)
        return w, b

    ks = jax.random.split(key, 8)
    p = {}
    p["w_emb"], p["b_emb"] = lin(ks[0], MET, EMBED)
    p["wq"], p["bq"] = lin(ks[1], EMBED, EMBED)
    p["wk"], p["bk"] = lin(ks[2], EMBED, EMBED)
    p["wv"], p["bv"] = lin(ks[3], EMBED, EMBED)
    p["wo"], p["bo"] = lin(ks[4], EMBED, EMBED)
    p["w1"], p["b1"] = lin(ks[5], EMBED, FFN)
    p["w2"], p["b2"] = lin(ks[6], FFN, EMBED)
    p["wfc_flat"], p["bfc"] = lin(ks[7], SEQ * EMBED, MET)
    p["pe"] = positional_encoding(30, EMBED)[:SEQ]
    return p


def pack_params(p):
    """Kernel-side operand layout: fused / transposed / bf16 weights, packed biases."""
    bf = jnp.bfloat16
    kp = {}
    kp["pe_b"] = p["pe"] + p["b_emb"]                                        # (S, D)  f32
    kp["w_emb"] = p["w_emb"].astype(bf)                                      # (MET, D)
    kp["wq"] = p["wq"].astype(bf)                                            # (D, D)
    kp["wkv_t"] = jnp.concatenate([p["wk"].T, p["wv"].T], axis=0).astype(bf)  # (2D, D)
    kp["bkv_t"] = jnp.concatenate([p["bk"], p["bv"]], axis=1).T              # (2D, 1) f32
    kp["b3"] = jnp.concatenate([p["bq"], p["bo"], p["b2"]], axis=0)          # (3, D)  f32
    kp["wo"] = p["wo"]                                                       # (D, D)  f32
    kp["w1"] = p["w1"].astype(bf)                                            # (D, FFN)
    kp["b1"] = p["b1"]                                                       # (1, FFN)
    kp["w2"] = p["w2"].astype(bf)                                            # (FFN, D)
    kp["wfc_t"] = p["wfc_flat"].reshape(SEQ, EMBED, MET).transpose(2, 0, 1)  # (MET, S, D)
    kp["bfc"] = p["bfc"].reshape(MET, 1, 1)                                  # (MET, 1, 1)
    return kp


def transformer_forward(x, kp):
    N = x.shape[0]

    def const(shape):
        return pl.BlockSpec(shape, lambda n, _nd=len(shape): (0,) * _nd)

    in_specs = [
        pl.BlockSpec((1, SEQ, MET), lambda n: (n, 0, 0)),   # x
        const((SEQ, EMBED)),                                # pe + b_emb
        const((MET, EMBED)),                                # word embedding (bf16)
        const((EMBED, EMBED)),                              # wq (bf16)
        const((2 * EMBED, EMBED)),                          # fused [wk; wv] transposed (bf16)
        const((2 * EMBED, 1)),                              # fused [bk; bv] transposed
        const((3, EMBED)),                                  # packed [bq; bo; b2]
        const((EMBED, EMBED)),                              # attention fc_out weight
        const((EMBED, FFN)),                                # ff linear 1 (bf16)
        const((1, FFN)),                                    # ff linear 1 bias
        const((FFN, EMBED)),                                # ff linear 2 (bf16)
        const((MET, SEQ, EMBED)),                           # encoder fc_out weight (M,S,D)
        const((MET, 1, 1)),                                 # encoder fc_out bias
    ]

    out4 = pl.pallas_call(
        transformer_kernel,
        out_shape=jax.ShapeDtypeStruct((N, MET, 1, 1), jnp.float32),
        grid=(N,),
        in_specs=in_specs,
        out_specs=pl.BlockSpec((1, MET, 1, 1), lambda n: (n, 0, 0, 0)),
        compiler_params=pltpu.CompilerParams(dimension_semantics=("parallel",)),
    )(x, kp["pe_b"],
      kp["w_emb"], kp["wq"], kp["wkv_t"], kp["bkv_t"], kp["b3"],
      kp["wo"], kp["w1"], kp["b1"], kp["w2"],
      kp["wfc_t"], kp["bfc"])

    # (N, MET, 1, 1) -> (N, 1, MET): pure layout plumbing outside the kernel.
    return out4.reshape(N, 1, MET)


def reference_forward(x, p):
    """Pure-JAX replica of the PyTorch forward (eval mode).

    The large matmuls cast their inputs to bf16 with f32 accumulation, mirroring the
    kernel's MXU precision policy; softmax uses exact division (the kernel uses an
    approximate reciprocal, covered by the comparison tolerance)."""
    def mm(a, w):
        return jnp.dot(a.astype(jnp.bfloat16), w.astype(jnp.bfloat16),
                       preferred_element_type=jnp.float32)

    N = x.shape[0]
    h = mm(x, p["w_emb"]) + p["b_emb"] + p["pe"][None]
    q = (mm(h, p["wq"]) + p["bq"]).reshape(N, SEQ, HEADS, HEAD_DIM)
    k = (mm(h, p["wk"]) + p["bk"]).reshape(N, SEQ, HEADS, HEAD_DIM)
    v = (mm(h, p["wv"]) + p["bv"]).reshape(N, SEQ, HEADS, HEAD_DIM)
    energy = jnp.einsum("nqhd,nkhd->nhqk", q, k)
    att = jax.nn.softmax(energy / math.sqrt(HEAD_DIM), axis=-1)
    o = jnp.einsum("nhqk,nkhd->nqhd", att, v).reshape(N, SEQ, EMBED)
    o = o @ p["wo"] + p["bo"]
    xres = o + h
    ff = jnp.maximum(mm(xres, p["w1"]) + p["b1"], 0.0)
    ff = mm(ff, p["w2"]) + p["b2"]
    out = ff + xres
    flat = out.reshape(N, 1, SEQ * EMBED)
    return flat @ p["wfc_flat"] + p["bfc"]


if __name__ == "__main__":
    key = jax.random.PRNGKey(0)
    kx, kparam = jax.random.split(key)
    # input: (batch, seq=20, meteorological)
    x = jax.random.normal(kx, (BATCH, SEQ, MET), dtype=jnp.float32)
    params = make_params(kparam)
    kparams = pack_params(params)

    y = transformer_forward(x, kparams)
    y = jax.block_until_ready(y)

    y_ref = reference_forward(x, params)
    assert y.shape == (BATCH, 1, MET)
    # tolerance covers the approximate-reciprocal softmax normalization and
    # accumulation-order differences; both sides use bf16 matmul inputs.
    assert jnp.allclose(y, y_ref, rtol=2e-2, atol=2e-2), "mismatch vs pure-JAX reference"

    print("KERNEL_OK")
</pallas_src>

<mosaic_0001>
module attributes {stable_mosaic.version = 11 : i64} {
  func.func @transformer_kernel(%arg0: i32, %arg1: memref<1x20x16xf32, #tpu.memory_space<vmem>>, %arg2: memref<20x64xf32, #tpu.memory_space<vmem>>, %arg3: memref<16x64xbf16, #tpu.memory_space<vmem>>, %arg4: memref<64x64xbf16, #tpu.memory_space<vmem>>, %arg5: memref<128x64xbf16, #tpu.memory_space<vmem>>, %arg6: memref<128x1xf32, #tpu.memory_space<vmem>>, %arg7: memref<3x64xf32, #tpu.memory_space<vmem>>, %arg8: memref<64x64xf32, #tpu.memory_space<vmem>>, %arg9: memref<64x256xbf16, #tpu.memory_space<vmem>>, %arg10: memref<1x256xf32, #tpu.memory_space<vmem>>, %arg11: memref<256x64xbf16, #tpu.memory_space<vmem>>, %arg12: memref<16x20x64xf32, #tpu.memory_space<vmem>>, %arg13: memref<16x1x1xf32, #tpu.memory_space<vmem>>, %arg14: memref<1x16x1x1xf32, #tpu.memory_space<vmem>>) attributes {dimension_semantics = [#tpu.dimension_semantics<parallel>], iteration_bounds = array<i64: 2>, scalar_prefetch = 0 : i64, scratch_operands = 0 : i64, tpu.core_type = #tpu.core_type<tc>, window_params = [{transform_indices = @transform_0, window_bounds = array<i64: 1, 20, 16>}, {pipeline_mode = #tpu.pipeline_mode<synchronous>, transform_indices = @transform_1, window_bounds = array<i64: 20, 64>}, {pipeline_mode = #tpu.pipeline_mode<synchronous>, transform_indices = @transform_2, window_bounds = array<i64: 16, 64>}, {pipeline_mode = #tpu.pipeline_mode<synchronous>, transform_indices = @transform_3, window_bounds = array<i64: 64, 64>}, {pipeline_mode = #tpu.pipeline_mode<synchronous>, transform_indices = @transform_4, window_bounds = array<i64: 128, 64>}, {pipeline_mode = #tpu.pipeline_mode<synchronous>, transform_indices = @transform_5, window_bounds = array<i64: 128, 1>}, {pipeline_mode = #tpu.pipeline_mode<synchronous>, transform_indices = @transform_6, window_bounds = array<i64: 3, 64>}, {pipeline_mode = #tpu.pipeline_mode<synchronous>, transform_indices = @transform_7, window_bounds = array<i64: 64, 64>}, {pipeline_mode = #tpu.pipeline_mode<synchronous>, transform_indices = @transform_8, window_bounds = array<i64: 64, 256>}, {pipeline_mode = #tpu.pipeline_mode<synchronous>, transform_indices = @transform_9, window_bounds = array<i64: 1, 256>}, {pipeline_mode = #tpu.pipeline_mode<synchronous>, transform_indices = @transform_10, window_bounds = array<i64: 256, 64>}, {pipeline_mode = #tpu.pipeline_mode<synchronous>, transform_indices = @transform_11, window_bounds = array<i64: 16, 20, 64>}, {pipeline_mode = #tpu.pipeline_mode<synchronous>, transform_indices = @transform_12, window_bounds = array<i64: 16, 1, 1>}, {transform_indices = @transform_13, window_bounds = array<i64: 1, 16, 1, 1>}]} {
    %c0 = arith.constant 0 : index
    %c0_0 = arith.constant 0 : index
    %c0_1 = arith.constant 0 : index
    %0 = vector.load %arg1[%c0, %c0_0, %c0_1] : memref<1x20x16xf32, #tpu.memory_space<vmem>>, vector<1x20x16xf32>
    %1 = vector.shape_cast %0 : vector<1x20x16xf32> to vector<20x16xf32>
    %2 = arith.truncf %1 : vector<20x16xf32> to vector<20x16xbf16>
    %c0_2 = arith.constant 0 : index
    %c0_3 = arith.constant 0 : index
    %3 = vector.load %arg3[%c0_2, %c0_3] : memref<16x64xbf16, #tpu.memory_space<vmem>>, vector<16x64xbf16>
    %cst = arith.constant dense<0.000000e+00> : vector<20x64xf32>
    %4 = tpu.matmul %2, %3, %cst {dimension_numbers = #tpu.dot_dimension_numbers<[1], [0], [0], [1], [0, 0, 1, 1], [], []>} : vector<20x16xbf16>, vector<16x64xbf16>, vector<20x64xf32> -> vector<20x64xf32>
    %c0_4 = arith.constant 0 : index
    %c0_5 = arith.constant 0 : index
    %5 = vector.load %arg2[%c0_4, %c0_5] : memref<20x64xf32, #tpu.memory_space<vmem>>, vector<20x64xf32>
    %6 = arith.addf %4, %5 : vector<20x64xf32>
    %7 = arith.truncf %6 : vector<20x64xf32> to vector<20x64xbf16>
    %c0_6 = arith.constant 0 : index
    %c0_7 = arith.constant 0 : index
    %8 = vector.load %arg7[%c0_6, %c0_7] : memref<3x64xf32, #tpu.memory_space<vmem>>, vector<1x64xf32>
    %c1 = arith.constant 1 : index
    %c0_8 = arith.constant 0 : index
    %9 = vector.load %arg7[%c1, %c0_8] : memref<3x64xf32, #tpu.memory_space<vmem>>, vector<1x64xf32>
    %c2 = arith.constant 2 : index
    %c0_9 = arith.constant 0 : index
    %10 = vector.load %arg7[%c2, %c0_9] : memref<3x64xf32, #tpu.memory_space<vmem>>, vector<1x64xf32>
    %c0_10 = arith.constant 0 : index
    %c0_11 = arith.constant 0 : index
    %11 = vector.load %arg4[%c0_10, %c0_11] : memref<64x64xbf16, #tpu.memory_space<vmem>>, vector<64x64xbf16>
    %cst_12 = arith.constant dense<0.000000e+00> : vector<20x64xf32>
    %12 = tpu.matmul %7, %11, %cst_12 {dimension_numbers = #tpu.dot_dimension_numbers<[1], [0], [0], [1], [0, 0, 1, 1], [], []>} : vector<20x64xbf16>, vector<64x64xbf16>, vector<20x64xf32> -> vector<20x64xf32>
    %13 = vector.broadcast %8 : vector<1x64xf32> to vector<20x64xf32>
    %14 = arith.addf %12, %13 : vector<20x64xf32>
    %c0_13 = arith.constant 0 : index
    %c0_14 = arith.constant 0 : index
    %15 = vector.load %arg5[%c0_13, %c0_14] : memref<128x64xbf16, #tpu.memory_space<vmem>>, vector<128x64xbf16>
    %cst_15 = arith.constant dense<0.000000e+00> : vector<128x20xf32>
    %16 = tpu.matmul %15, %7, %cst_15 {dimension_numbers = #tpu.dot_dimension_numbers<[1], [1], [0], [0], [0, 0, 1, 0], [], []>} : vector<128x64xbf16>, vector<20x64xbf16>, vector<128x20xf32> -> vector<128x20xf32>
    %c0_16 = arith.constant 0 : index
    %c0_17 = arith.constant 0 : index
    %17 = vector.load %arg6[%c0_16, %c0_17] : memref<128x1xf32, #tpu.memory_space<vmem>>, vector<128x1xf32>
    %18 = vector.broadcast %17 : vector<128x1xf32> to vector<128x20xf32>
    %19 = arith.addf %16, %18 : vector<128x20xf32>
    %20 = vector.extract_strided_slice %19 {offsets = [0, 0], sizes = [64, 20], strides = [1, 1]} : vector<128x20xf32> to vector<64x20xf32>
    %21 = vector.extract_strided_slice %19 {offsets = [64, 0], sizes = [64, 20], strides = [1, 1]} : vector<128x20xf32> to vector<64x20xf32>
    %cst_18 = arith.constant 0.000000e+00 : f32
    %22 = vector.broadcast %cst_18 : f32 to vector<20x64xf32>
    %23 = vector.extract_strided_slice %14 {offsets = [0, 0], sizes = [20, 8], strides = [1, 1]} : vector<20x64xf32> to vector<20x8xf32>
    %24 = vector.extract_strided_slice %20 {offsets = [0, 0], sizes = [8, 20], strides = [1, 1]} : vector<64x20xf32> to vector<8x20xf32>
    %25 = vector.extract_strided_slice %21 {offsets = [0, 0], sizes = [8, 20], strides = [1, 1]} : vector<64x20xf32> to vector<8x20xf32>
    %cst_19 = arith.constant dense<0.000000e+00> : vector<20x20xf32>
    %26 = tpu.matmul %23, %24, %cst_19 {dimension_numbers = #tpu.dot_dimension_numbers<[1], [0], [0], [1], [0, 0, 1, 1], [], []>} : vector<20x8xf32>, vector<8x20xf32>, vector<20x20xf32> -> vector<20x20xf32>
    %cst_20 = arith.constant 0.353553385 : f32
    %27 = vector.broadcast %cst_20 : f32 to vector<20x20xf32>
    %28 = arith.mulf %26, %27 : vector<20x20xf32>
    %cst_21 = arith.constant dense<0xFF800000> : vector<20xf32>
    %29 = vector.multi_reduction <maximumf>, %28, %cst_21 [1] : vector<20x20xf32> to vector<20xf32>
    %30 = vector.shape_cast %29 : vector<20xf32> to vector<20x1xf32>
    %31 = vector.broadcast %30 : vector<20x1xf32> to vector<20x20xf32>
    %32 = arith.subf %28, %31 : vector<20x20xf32>
    %33 = math.exp %32 : vector<20x20xf32>
    %cst_22 = arith.constant dense<0.000000e+00> : vector<20xf32>
    %34 = vector.multi_reduction <add>, %33, %cst_22 [1] : vector<20x20xf32> to vector<20xf32>
    %35 = vector.shape_cast %34 : vector<20xf32> to vector<20x1xf32>
    %36 = tpu.reciprocal %35 {approx = true} : vector<20x1xf32> -> vector<20x1xf32>
    %37 = vector.broadcast %36 : vector<20x1xf32> to vector<20x20xf32>
    %38 = arith.mulf %33, %37 : vector<20x20xf32>
    %cst_23 = arith.constant dense<0.000000e+00> : vector<20x8xf32>
    %39 = tpu.matmul %38, %25, %cst_23 {dimension_numbers = #tpu.dot_dimension_numbers<[1], [1], [0], [0], [0, 0, 1, 0], [], []>} : vector<20x20xf32>, vector<8x20xf32>, vector<20x8xf32> -> vector<20x8xf32>
    %c0_24 = arith.constant 0 : index
    %c0_25 = arith.constant 0 : index
    %40 = vector.load %arg8[%c0_24, %c0_25] : memref<64x64xf32, #tpu.memory_space<vmem>>, vector<8x64xf32>
    %cst_26 = arith.constant dense<0.000000e+00> : vector<20x64xf32>
    %41 = tpu.matmul %39, %40, %cst_26 {dimension_numbers = #tpu.dot_dimension_numbers<[1], [0], [0], [1], [0, 0, 1, 1], [], []>} : vector<20x8xf32>, vector<8x64xf32>, vector<20x64xf32> -> vector<20x64xf32>
    %42 = arith.addf %22, %41 : vector<20x64xf32>
    %43 = vector.extract_strided_slice %14 {offsets = [0, 8], sizes = [20, 8], strides = [1, 1]} : vector<20x64xf32> to vector<20x8xf32>
    %44 = vector.extract_strided_slice %20 {offsets = [8, 0], sizes = [8, 20], strides = [1, 1]} : vector<64x20xf32> to vector<8x20xf32>
    %45 = vector.extract_strided_slice %21 {offsets = [8, 0], sizes = [8, 20], strides = [1, 1]} : vector<64x20xf32> to vector<8x20xf32>
    %cst_27 = arith.constant dense<0.000000e+00> : vector<20x20xf32>
    %46 = tpu.matmul %43, %44, %cst_27 {dimension_numbers = #tpu.dot_dimension_numbers<[1], [0], [0], [1], [0, 0, 1, 1], [], []>} : vector<20x8xf32>, vector<8x20xf32>, vector<20x20xf32> -> vector<20x20xf32>
    %cst_28 = arith.constant 0.353553385 : f32
    %47 = vector.broadcast %cst_28 : f32 to vector<20x20xf32>
    %48 = arith.mulf %46, %47 : vector<20x20xf32>
    %cst_29 = arith.constant dense<0xFF800000> : vector<20xf32>
    %49 = vector.multi_reduction <maximumf>, %48, %cst_29 [1] : vector<20x20xf32> to vector<20xf32>
    %50 = vector.shape_cast %49 : vector<20xf32> to vector<20x1xf32>
    %51 = vector.broadcast %50 : vector<20x1xf32> to vector<20x20xf32>
    %52 = arith.subf %48, %51 : vector<20x20xf32>
    %53 = math.exp %52 : vector<20x20xf32>
    %cst_30 = arith.constant dense<0.000000e+00> : vector<20xf32>
    %54 = vector.multi_reduction <add>, %53, %cst_30 [1] : vector<20x20xf32> to vector<20xf32>
    %55 = vector.shape_cast %54 : vector<20xf32> to vector<20x1xf32>
    %56 = tpu.reciprocal %55 {approx = true} : vector<20x1xf32> -> vector<20x1xf32>
    %57 = vector.broadcast %56 : vector<20x1xf32> to vector<20x20xf32>
    %58 = arith.mulf %53, %57 : vector<20x20xf32>
    %cst_31 = arith.constant dense<0.000000e+00> : vector<20x8xf32>
    %59 = tpu.matmul %58, %45, %cst_31 {dimension_numbers = #tpu.dot_dimension_numbers<[1], [1], [0], [0], [0, 0, 1, 0], [], []>} : vector<20x20xf32>, vector<8x20xf32>, vector<20x8xf32> -> vector<20x8xf32>
    %c8 = arith.constant 8 : index
    %c0_32 = arith.constant 0 : index
    %60 = vector.load %arg8[%c8, %c0_32] : memref<64x64xf32, #tpu.memory_space<vmem>>, vector<8x64xf32>
    %cst_33 = arith.constant dense<0.000000e+00> : vector<20x64xf32>
    %61 = tpu.matmul %59, %60, %cst_33 {dimension_numbers = #tpu.dot_dimension_numbers<[1], [0], [0], [1], [0, 0, 1, 1], [], []>} : vector<20x8xf32>, vector<8x64xf32>, vector<20x64xf32> -> vector<20x64xf32>
    %62 = arith.addf %42, %61 : vector<20x64xf32>
    %63 = vector.extract_strided_slice %14 {offsets = [0, 16], sizes = [20, 8], strides = [1, 1]} : vector<20x64xf32> to vector<20x8xf32>
    %64 = vector.extract_strided_slice %20 {offsets = [16, 0], sizes = [8, 20], strides = [1, 1]} : vector<64x20xf32> to vector<8x20xf32>
    %65 = vector.extract_strided_slice %21 {offsets = [16, 0], sizes = [8, 20], strides = [1, 1]} : vector<64x20xf32> to vector<8x20xf32>
    %cst_34 = arith.constant dense<0.000000e+00> : vector<20x20xf32>
    %66 = tpu.matmul %63, %64, %cst_34 {dimension_numbers = #tpu.dot_dimension_numbers<[1], [0], [0], [1], [0, 0, 1, 1], [], []>} : vector<20x8xf32>, vector<8x20xf32>, vector<20x20xf32> -> vector<20x20xf32>
    %cst_35 = arith.constant 0.353553385 : f32
    %67 = vector.broadcast %cst_35 : f32 to vector<20x20xf32>
    %68 = arith.mulf %66, %67 : vector<20x20xf32>
    %cst_36 = arith.constant dense<0xFF800000> : vector<20xf32>
    %69 = vector.multi_reduction <maximumf>, %68, %cst_36 [1] : vector<20x20xf32> to vector<20xf32>
    %70 = vector.shape_cast %69 : vector<20xf32> to vector<20x1xf32>
    %71 = vector.broadcast %70 : vector<20x1xf32> to vector<20x20xf32>
    %72 = arith.subf %68, %71 : vector<20x20xf32>
    %73 = math.exp %72 : vector<20x20xf32>
    %cst_37 = arith.constant dense<0.000000e+00> : vector<20xf32>
    %74 = vector.multi_reduction <add>, %73, %cst_37 [1] : vector<20x20xf32> to vector<20xf32>
    %75 = vector.shape_cast %74 : vector<20xf32> to vector<20x1xf32>
    %76 = tpu.reciprocal %75 {approx = true} : vector<20x1xf32> -> vector<20x1xf32>
    %77 = vector.broadcast %76 : vector<20x1xf32> to vector<20x20xf32>
    %78 = arith.mulf %73, %77 : vector<20x20xf32>
    %cst_38 = arith.constant dense<0.000000e+00> : vector<20x8xf32>
    %79 = tpu.matmul %78, %65, %cst_38 {dimension_numbers = #tpu.dot_dimension_numbers<[1], [1], [0], [0], [0, 0, 1, 0], [], []>} : vector<20x20xf32>, vector<8x20xf32>, vector<20x8xf32> -> vector<20x8xf32>
    %c16 = arith.constant 16 : index
    %c0_39 = arith.constant 0 : index
    %80 = vector.load %arg8[%c16, %c0_39] : memref<64x64xf32, #tpu.memory_space<vmem>>, vector<8x64xf32>
    %cst_40 = arith.constant dense<0.000000e+00> : vector<20x64xf32>
    %81 = tpu.matmul %79, %80, %cst_40 {dimension_numbers = #tpu.dot_dimension_numbers<[1], [0], [0], [1], [0, 0, 1, 1], [], []>} : vector<20x8xf32>, vector<8x64xf32>, vector<20x64xf32> -> vector<20x64xf32>
    %82 = arith.addf %62, %81 : vector<20x64xf32>
    %83 = vector.extract_strided_slice %14 {offsets = [0, 24], sizes = [20, 8], strides = [1, 1]} : vector<20x64xf32> to vector<20x8xf32>
    %84 = vector.extract_strided_slice %20 {offsets = [24, 0], sizes = [8, 20], strides = [1, 1]} : vector<64x20xf32> to vector<8x20xf32>
    %85 = vector.extract_strided_slice %21 {offsets = [24, 0], sizes = [8, 20], strides = [1, 1]} : vector<64x20xf32> to vector<8x20xf32>
    %cst_41 = arith.constant dense<0.000000e+00> : vector<20x20xf32>
    %86 = tpu.matmul %83, %84, %cst_41 {dimension_numbers = #tpu.dot_dimension_numbers<[1], [0], [0], [1], [0, 0, 1, 1], [], []>} : vector<20x8xf32>, vector<8x20xf32>, vector<20x20xf32> -> vector<20x20xf32>
    %cst_42 = arith.constant 0.353553385 : f32
    %87 = vector.broadcast %cst_42 : f32 to vector<20x20xf32>
    %88 = arith.mulf %86, %87 : vector<20x20xf32>
    %cst_43 = arith.constant dense<0xFF800000> : vector<20xf32>
    %89 = vector.multi_reduction <maximumf>, %88, %cst_43 [1] : vector<20x20xf32> to vector<20xf32>
    %90 = vector.shape_cast %89 : vector<20xf32> to vector<20x1xf32>
    %91 = vector.broadcast %90 : vector<20x1xf32> to vector<20x20xf32>
    %92 = arith.subf %88, %91 : vector<20x20xf32>
    %93 = math.exp %92 : vector<20x20xf32>
    %cst_44 = arith.constant dense<0.000000e+00> : vector<20xf32>
    %94 = vector.multi_reduction <add>, %93, %cst_44 [1] : vector<20x20xf32> to vector<20xf32>
    %95 = vector.shape_cast %94 : vector<20xf32> to vector<20x1xf32>
    %96 = tpu.reciprocal %95 {approx = true} : vector<20x1xf32> -> vector<20x1xf32>
    %97 = vector.broadcast %96 : vector<20x1xf32> to vector<20x20xf32>
    %98 = arith.mulf %93, %97 : vector<20x20xf32>
    %cst_45 = arith.constant dense<0.000000e+00> : vector<20x8xf32>
    %99 = tpu.matmul %98, %85, %cst_45 {dimension_numbers = #tpu.dot_dimension_numbers<[1], [1], [0], [0], [0, 0, 1, 0], [], []>} : vector<20x20xf32>, vector<8x20xf32>, vector<20x8xf32> -> vector<20x8xf32>
    %c24 = arith.constant 24 : index
    %c0_46 = arith.constant 0 : index
    %100 = vector.load %arg8[%c24, %c0_46] : memref<64x64xf32, #tpu.memory_space<vmem>>, vector<8x64xf32>
    %cst_47 = arith.constant dense<0.000000e+00> : vector<20x64xf32>
    %101 = tpu.matmul %99, %100, %cst_47 {dimension_numbers = #tpu.dot_dimension_numbers<[1], [0], [0], [1], [0, 0, 1, 1], [], []>} : vector<20x8xf32>, vector<8x64xf32>, vector<20x64xf32> -> vector<20x64xf32>
    %102 = arith.addf %82, %101 : vector<20x64xf32>
    %103 = vector.extract_strided_slice %14 {offsets = [0, 32], sizes = [20, 8], strides = [1, 1]} : vector<20x64xf32> to vector<20x8xf32>
    %104 = vector.extract_strided_slice %20 {offsets = [32, 0], sizes = [8, 20], strides = [1, 1]} : vector<64x20xf32> to vector<8x20xf32>
    %105 = vector.extract_strided_slice %21 {offsets = [32, 0], sizes = [8, 20], strides = [1, 1]} : vector<64x20xf32> to vector<8x20xf32>
    %cst_48 = arith.constant dense<0.000000e+00> : vector<20x20xf32>
    %106 = tpu.matmul %103, %104, %cst_48 {dimension_numbers = #tpu.dot_dimension_numbers<[1], [0], [0], [1], [0, 0, 1, 1], [], []>} : vector<20x8xf32>, vector<8x20xf32>, vector<20x20xf32> -> vector<20x20xf32>
    %cst_49 = arith.constant 0.353553385 : f32
    %107 = vector.broadcast %cst_49 : f32 to vector<20x20xf32>
    %108 = arith.mulf %106, %107 : vector<20x20xf32>
    %cst_50 = arith.constant dense<0xFF800000> : vector<20xf32>
    %109 = vector.multi_reduction <maximumf>, %108, %cst_50 [1] : vector<20x20xf32> to vector<20xf32>
    %110 = vector.shape_cast %109 : vector<20xf32> to vector<20x1xf32>
    %111 = vector.broadcast %110 : vector<20x1xf32> to vector<20x20xf32>
    %112 = arith.subf %108, %111 : vector<20x20xf32>
    %113 = math.exp %112 : vector<20x20xf32>
    %cst_51 = arith.constant dense<0.000000e+00> : vector<20xf32>
    %114 = vector.multi_reduction <add>, %113, %cst_51 [1] : vector<20x20xf32> to vector<20xf32>
    %115 = vector.shape_cast %114 : vector<20xf32> to vector<20x1xf32>
    %116 = tpu.reciprocal %115 {approx = true} : vector<20x1xf32> -> vector<20x1xf32>
    %117 = vector.broadcast %116 : vector<20x1xf32> to vector<20x20xf32>
    %118 = arith.mulf %113, %117 : vector<20x20xf32>
    %cst_52 = arith.constant dense<0.000000e+00> : vector<20x8xf32>
    %119 = tpu.matmul %118, %105, %cst_52 {dimension_numbers = #tpu.dot_dimension_numbers<[1], [1], [0], [0], [0, 0, 1, 0], [], []>} : vector<20x20xf32>, vector<8x20xf32>, vector<20x8xf32> -> vector<20x8xf32>
    %c32 = arith.constant 32 : index
    %c0_53 = arith.constant 0 : index
    %120 = vector.load %arg8[%c32, %c0_53] : memref<64x64xf32, #tpu.memory_space<vmem>>, vector<8x64xf32>
    %cst_54 = arith.constant dense<0.000000e+00> : vector<20x64xf32>
    %121 = tpu.matmul %119, %120, %cst_54 {dimension_numbers = #tpu.dot_dimension_numbers<[1], [0], [0], [1], [0, 0, 1, 1], [], []>} : vector<20x8xf32>, vector<8x64xf32>, vector<20x64xf32> -> vector<20x64xf32>
    %122 = arith.addf %102, %121 : vector<20x64xf32>
    %123 = vector.extract_strided_slice %14 {offsets = [0, 40], sizes = [20, 8], strides = [1, 1]} : vector<20x64xf32> to vector<20x8xf32>
    %124 = vector.extract_strided_slice %20 {offsets = [40, 0], sizes = [8, 20], strides = [1, 1]} : vector<64x20xf32> to vector<8x20xf32>
    %125 = vector.extract_strided_slice %21 {offsets = [40, 0], sizes = [8, 20], strides = [1, 1]} : vector<64x20xf32> to vector<8x20xf32>
    %cst_55 = arith.constant dense<0.000000e+00> : vector<20x20xf32>
    %126 = tpu.matmul %123, %124, %cst_55 {dimension_numbers = #tpu.dot_dimension_numbers<[1], [0], [0], [1], [0, 0, 1, 1], [], []>} : vector<20x8xf32>, vector<8x20xf32>, vector<20x20xf32> -> vector<20x20xf32>
    %cst_56 = arith.constant 0.353553385 : f32
    %127 = vector.broadcast %cst_56 : f32 to vector<20x20xf32>
    %128 = arith.mulf %126, %127 : vector<20x20xf32>
    %cst_57 = arith.constant dense<0xFF800000> : vector<20xf32>
    %129 = vector.multi_reduction <maximumf>, %128, %cst_57 [1] : vector<20x20xf32> to vector<20xf32>
    %130 = vector.shape_cast %129 : vector<20xf32> to vector<20x1xf32>
    %131 = vector.broadcast %130 : vector<20x1xf32> to vector<20x20xf32>
    %132 = arith.subf %128, %131 : vector<20x20xf32>
    %133 = math.exp %132 : vector<20x20xf32>
    %cst_58 = arith.constant dense<0.000000e+00> : vector<20xf32>
    %134 = vector.multi_reduction <add>, %133, %cst_58 [1] : vector<20x20xf32> to vector<20xf32>
    %135 = vector.shape_cast %134 : vector<20xf32> to vector<20x1xf32>
    %136 = tpu.reciprocal %135 {approx = true} : vector<20x1xf32> -> vector<20x1xf32>
    %137 = vector.broadcast %136 : vector<20x1xf32> to vector<20x20xf32>
    %138 = arith.mulf %133, %137 : vector<20x20xf32>
    %cst_59 = arith.constant dense<0.000000e+00> : vector<20x8xf32>
    %139 = tpu.matmul %138, %125, %cst_59 {dimension_numbers = #tpu.dot_dimension_numbers<[1], [1], [0], [0], [0, 0, 1, 0], [], []>} : vector<20x20xf32>, vector<8x20xf32>, vector<20x8xf32> -> vector<20x8xf32>
    %c40 = arith.constant 40 : index
    %c0_60 = arith.constant 0 : index
    %140 = vector.load %arg8[%c40, %c0_60] : memref<64x64xf32, #tpu.memory_space<vmem>>, vector<8x64xf32>
    %cst_61 = arith.constant dense<0.000000e+00> : vector<20x64xf32>
    %141 = tpu.matmul %139, %140, %cst_61 {dimension_numbers = #tpu.dot_dimension_numbers<[1], [0], [0], [1], [0, 0, 1, 1], [], []>} : vector<20x8xf32>, vector<8x64xf32>, vector<20x64xf32> -> vector<20x64xf32>
    %142 = arith.addf %122, %141 : vector<20x64xf32>
    %143 = vector.extract_strided_slice %14 {offsets = [0, 48], sizes = [20, 8], strides = [1, 1]} : vector<20x64xf32> to vector<20x8xf32>
    %144 = vector.extract_strided_slice %20 {offsets = [48, 0], sizes = [8, 20], strides = [1, 1]} : vector<64x20xf32> to vector<8x20xf32>
    %145 = vector.extract_strided_slice %21 {offsets = [48, 0], sizes = [8, 20], strides = [1, 1]} : vector<64x20xf32> to vector<8x20xf32>
    %cst_62 = arith.constant dense<0.000000e+00> : vector<20x20xf32>
    %146 = tpu.matmul %143, %144, %cst_62 {dimension_numbers = #tpu.dot_dimension_numbers<[1], [0], [0], [1], [0, 0, 1, 1], [], []>} : vector<20x8xf32>, vector<8x20xf32>, vector<20x20xf32> -> vector<20x20xf32>
    %cst_63 = arith.constant 0.353553385 : f32
    %147 = vector.broadcast %cst_63 : f32 to vector<20x20xf32>
    %148 = arith.mulf %146, %147 : vector<20x20xf32>
    %cst_64 = arith.constant dense<0xFF800000> : vector<20xf32>
    %149 = vector.multi_reduction <maximumf>, %148, %cst_64 [1] : vector<20x20xf32> to vector<20xf32>
    %150 = vector.shape_cast %149 : vector<20xf32> to vector<20x1xf32>
    %151 = vector.broadcast %150 : vector<20x1xf32> to vector<20x20xf32>
    %152 = arith.subf %148, %151 : vector<20x20xf32>
    %153 = math.exp %152 : vector<20x20xf32>
    %cst_65 = arith.constant dense<0.000000e+00> : vector<20xf32>
    %154 = vector.multi_reduction <add>, %153, %cst_65 [1] : vector<20x20xf32> to vector<20xf32>
    %155 = vector.shape_cast %154 : vector<20xf32> to vector<20x1xf32>
    %156 = tpu.reciprocal %155 {approx = true} : vector<20x1xf32> -> vector<20x1xf32>
    %157 = vector.broadcast %156 : vector<20x1xf32> to vector<20x20xf32>
    %158 = arith.mulf %153, %157 : vector<20x20xf32>
    %cst_66 = arith.constant dense<0.000000e+00> : vector<20x8xf32>
    %159 = tpu.matmul %158, %145, %cst_66 {dimension_numbers = #tpu.dot_dimension_numbers<[1], [1], [0], [0], [0, 0, 1, 0], [], []>} : vector<20x20xf32>, vector<8x20xf32>, vector<20x8xf32> -> vector<20x8xf32>
    %c48 = arith.constant 48 : index
    %c0_67 = arith.constant 0 : index
    %160 = vector.load %arg8[%c48, %c0_67] : memref<64x64xf32, #tpu.memory_space<vmem>>, vector<8x64xf32>
    %cst_68 = arith.constant dense<0.000000e+00> : vector<20x64xf32>
    %161 = tpu.matmul %159, %160, %cst_68 {dimension_numbers = #tpu.dot_dimension_numbers<[1], [0], [0], [1], [0, 0, 1, 1], [], []>} : vector<20x8xf32>, vector<8x64xf32>, vector<20x64xf32> -> vector<20x64xf32>
    %162 = arith.addf %142, %161 : vector<20x64xf32>
    %163 = vector.extract_strided_slice %14 {offsets = [0, 56], sizes = [20, 8], strides = [1, 1]} : vector<20x64xf32> to vector<20x8xf32>
    %164 = vector.extract_strided_slice %20 {offsets = [56, 0], sizes = [8, 20], strides = [1, 1]} : vector<64x20xf32> to vector<8x20xf32>
    %165 = vector.extract_strided_slice %21 {offsets = [56, 0], sizes = [8, 20], strides = [1, 1]} : vector<64x20xf32> to vector<8x20xf32>
    %cst_69 = arith.constant dense<0.000000e+00> : vector<20x20xf32>
    %166 = tpu.matmul %163, %164, %cst_69 {dimension_numbers = #tpu.dot_dimension_numbers<[1], [0], [0], [1], [0, 0, 1, 1], [], []>} : vector<20x8xf32>, vector<8x20xf32>, vector<20x20xf32> -> vector<20x20xf32>
    %cst_70 = arith.constant 0.353553385 : f32
    %167 = vector.broadcast %cst_70 : f32 to vector<20x20xf32>
    %168 = arith.mulf %166, %167 : vector<20x20xf32>
    %cst_71 = arith.constant dense<0xFF800000> : vector<20xf32>
    %169 = vector.multi_reduction <maximumf>, %168, %cst_71 [1] : vector<20x20xf32> to vector<20xf32>
    %170 = vector.shape_cast %169 : vector<20xf32> to vector<20x1xf32>
    %171 = vector.broadcast %170 : vector<20x1xf32> to vector<20x20xf32>
    %172 = arith.subf %168, %171 : vector<20x20xf32>
    %173 = math.exp %172 : vector<20x20xf32>
    %cst_72 = arith.constant dense<0.000000e+00> : vector<20xf32>
    %174 = vector.multi_reduction <add>, %173, %cst_72 [1] : vector<20x20xf32> to vector<20xf32>
    %175 = vector.shape_cast %174 : vector<20xf32> to vector<20x1xf32>
    %176 = tpu.reciprocal %175 {approx = true} : vector<20x1xf32> -> vector<20x1xf32>
    %177 = vector.broadcast %176 : vector<20x1xf32> to vector<20x20xf32>
    %178 = arith.mulf %173, %177 : vector<20x20xf32>
    %cst_73 = arith.constant dense<0.000000e+00> : vector<20x8xf32>
    %179 = tpu.matmul %178, %165, %cst_73 {dimension_numbers = #tpu.dot_dimension_numbers<[1], [1], [0], [0], [0, 0, 1, 0], [], []>} : vector<20x20xf32>, vector<8x20xf32>, vector<20x8xf32> -> vector<20x8xf32>
    %c56 = arith.constant 56 : index
    %c0_74 = arith.constant 0 : index
    %180 = vector.load %arg8[%c56, %c0_74] : memref<64x64xf32, #tpu.memory_space<vmem>>, vector<8x64xf32>
    %cst_75 = arith.constant dense<0.000000e+00> : vector<20x64xf32>
    %181 = tpu.matmul %179, %180, %cst_75 {dimension_numbers = #tpu.dot_dimension_numbers<[1], [0], [0], [1], [0, 0, 1, 1], [], []>} : vector<20x8xf32>, vector<8x64xf32>, vector<20x64xf32> -> vector<20x64xf32>
    %182 = arith.addf %162, %181 : vector<20x64xf32>
    %183 = vector.broadcast %9 : vector<1x64xf32> to vector<20x64xf32>
    %184 = arith.addf %182, %183 : vector<20x64xf32>
    %185 = arith.addf %184, %6 : vector<20x64xf32>
    %186 = arith.truncf %185 : vector<20x64xf32> to vector<20x64xbf16>
    %c0_76 = arith.constant 0 : index
    %c0_77 = arith.constant 0 : index
    %187 = vector.load %arg9[%c0_76, %c0_77] : memref<64x256xbf16, #tpu.memory_space<vmem>>, vector<64x256xbf16>
    %cst_78 = arith.constant dense<0.000000e+00> : vector<20x256xf32>
    %188 = tpu.matmul %186, %187, %cst_78 {dimension_numbers = #tpu.dot_dimension_numbers<[1], [0], [0], [1], [0, 0, 1, 1], [], []>} : vector<20x64xbf16>, vector<64x256xbf16>, vector<20x256xf32> -> vector<20x256xf32>
    %c0_79 = arith.constant 0 : index
    %c0_80 = arith.constant 0 : index
    %189 = vector.load %arg10[%c0_79, %c0_80] : memref<1x256xf32, #tpu.memory_space<vmem>>, vector<1x256xf32>
    %190 = vector.broadcast %189 : vector<1x256xf32> to vector<20x256xf32>
    %191 = arith.addf %188, %190 : vector<20x256xf32>
    %cst_81 = arith.constant 0.000000e+00 : f32
    %192 = vector.broadcast %cst_81 : f32 to vector<20x256xf32>
    %193 = arith.maximumf %191, %192 : vector<20x256xf32>
    %194 = arith.truncf %193 : vector<20x256xf32> to vector<20x256xbf16>
    %c0_82 = arith.constant 0 : index
    %c0_83 = arith.constant 0 : index
    %195 = vector.load %arg11[%c0_82, %c0_83] : memref<256x64xbf16, #tpu.memory_space<vmem>>, vector<256x64xbf16>
    %cst_84 = arith.constant dense<0.000000e+00> : vector<20x64xf32>
    %196 = tpu.matmul %194, %195, %cst_84 {dimension_numbers = #tpu.dot_dimension_numbers<[1], [0], [0], [1], [0, 0, 1, 1], [], []>} : vector<20x256xbf16>, vector<256x64xbf16>, vector<20x64xf32> -> vector<20x64xf32>
    %197 = vector.broadcast %10 : vector<1x64xf32> to vector<20x64xf32>
    %198 = arith.addf %196, %197 : vector<20x64xf32>
    %199 = arith.addf %198, %185 : vector<20x64xf32>
    %200 = vector.shape_cast %199 : vector<20x64xf32> to vector<1x20x64xf32>
    %c0_85 = arith.constant 0 : index
    %c0_86 = arith.constant 0 : index
    %c0_87 = arith.constant 0 : index
    %201 = vector.load %arg12[%c0_85, %c0_86, %c0_87] : memref<16x20x64xf32, #tpu.memory_space<vmem>>, vector<16x20x64xf32>
    %202 = vector.broadcast %200 : vector<1x20x64xf32> to vector<16x20x64xf32>
    %203 = arith.mulf %202, %201 : vector<16x20x64xf32>
    %cst_88 = arith.constant dense<0.000000e+00> : vector<16x20xf32>
    %204 = vector.multi_reduction <add>, %203, %cst_88 [2] : vector<16x20x64xf32> to vector<16x20xf32>
    %205 = vector.shape_cast %204 : vector<16x20xf32> to vector<16x20x1xf32>
    %cst_89 = arith.constant dense<0.000000e+00> : vector<16x1xf32>
    %206 = vector.multi_reduction <add>, %205, %cst_89 [1] : vector<16x20x1xf32> to vector<16x1xf32>
    %207 = vector.shape_cast %206 : vector<16x1xf32> to vector<16x1x1xf32>
    %c0_90 = arith.constant 0 : index
    %c0_91 = arith.constant 0 : index
    %c0_92 = arith.constant 0 : index
    %208 = vector.load %arg13[%c0_90, %c0_91, %c0_92] : memref<16x1x1xf32, #tpu.memory_space<vmem>>, vector<16x1x1xf32>
    %209 = arith.addf %207, %208 : vector<16x1x1xf32>
    %c0_93 = arith.constant 0 : index
    %c0_94 = arith.constant 0 : index
    %c0_95 = arith.constant 0 : index
    %c0_96 = arith.constant 0 : index
    %210 = vector.load %arg14[%c0_93, %c0_94, %c0_95, %c0_96] : memref<1x16x1x1xf32, #tpu.memory_space<vmem>>, vector<1x16x1x1xf32>
    %211 = vector.shape_cast %210 : vector<1x16x1x1xf32> to vector<16x1x1xf32>
    %212 = vector.shape_cast %209 : vector<16x1x1xf32> to vector<1x16x1x1xf32>
    tpu.vector_store %arg14[%c0_93, %c0_94, %c0_95, %c0_96], %212 {strides = array<i32>} : memref<1x16x1x1xf32, #tpu.memory_space<vmem>>, vector<1x16x1x1xf32>,
    return
  }
  func.func @transform_0(%arg0: i32) -> (i32, i32, i32) {
    %c0_i32 = arith.constant 0 : i32
    %c0_i32_0 = arith.constant 0 : i32
    %c0_i32_1 = arith.constant 0 : i32
    return %arg0, %c0_i32, %c0_i32_0 : i32, i32, i32
  }
  func.func @transform_1(%arg0: i32) -> (i32, i32) {
    %c0_i32 = arith.constant 0 : i32
    %c0_i32_0 = arith.constant 0 : i32
    %c0_i32_1 = arith.constant 0 : i32
    return %c0_i32, %c0_i32_0 : i32, i32
  }
  func.func @transform_2(%arg0: i32) -> (i32, i32) {
    %c0_i32 = arith.constant 0 : i32
    %c0_i32_0 = arith.constant 0 : i32
    %c0_i32_1 = arith.constant 0 : i32
    return %c0_i32, %c0_i32_0 : i32, i32
  }
  func.func @transform_3(%arg0: i32) -> (i32, i32) {
    %c0_i32 = arith.constant 0 : i32
    %c0_i32_0 = arith.constant 0 : i32
    %c0_i32_1 = arith.constant 0 : i32
    return %c0_i32, %c0_i32_0 : i32, i32
  }
  func.func @transform_4(%arg0: i32) -> (i32, i32) {
    %c0_i32 = arith.constant 0 : i32
    %c0_i32_0 = arith.constant 0 : i32
    %c0_i32_1 = arith.constant 0 : i32
    return %c0_i32, %c0_i32_0 : i32, i32
  }
  func.func @transform_5(%arg0: i32) -> (i32, i32) {
    %c0_i32 = arith.constant 0 : i32
    %c0_i32_0 = arith.constant 0 : i32
    %c0_i32_1 = arith.constant 0 : i32
    return %c0_i32, %c0_i32_0 : i32, i32
  }
  func.func @transform_6(%arg0: i32) -> (i32, i32) {
    %c0_i32 = arith.constant 0 : i32
    %c0_i32_0 = arith.constant 0 : i32
    %c0_i32_1 = arith.constant 0 : i32
    return %c0_i32, %c0_i32_0 : i32, i32
  }
  func.func @transform_7(%arg0: i32) -> (i32, i32) {
    %c0_i32 = arith.constant 0 : i32
    %c0_i32_0 = arith.constant 0 : i32
    %c0_i32_1 = arith.constant 0 : i32
    return %c0_i32, %c0_i32_0 : i32, i32
  }
  func.func @transform_8(%arg0: i32) -> (i32, i32) {
    %c0_i32 = arith.constant 0 : i32
    %c0_i32_0 = arith.constant 0 : i32
    %c0_i32_1 = arith.constant 0 : i32
    return %c0_i32, %c0_i32_0 : i32, i32
  }
  func.func @transform_9(%arg0: i32) -> (i32, i32) {
    %c0_i32 = arith.constant 0 : i32
    %c0_i32_0 = arith.constant 0 : i32
    %c0_i32_1 = arith.constant 0 : i32
    return %c0_i32, %c0_i32_0 : i32, i32
  }
  func.func @transform_10(%arg0: i32) -> (i32, i32) {
    %c0_i32 = arith.constant 0 : i32
    %c0_i32_0 = arith.constant 0 : i32
    %c0_i32_1 = arith.constant 0 : i32
    return %c0_i32, %c0_i32_0 : i32, i32
  }
  func.func @transform_11(%arg0: i32) -> (i32, i32, i32) {
    %c0_i32 = arith.constant 0 : i32
    %c0_i32_0 = arith.constant 0 : i32
    %c0_i32_1 = arith.constant 0 : i32
    %c0_i32_2 = arith.constant 0 : i32
    return %c0_i32, %c0_i32_0, %c0_i32_1 : i32, i32, i32
  }
  func.func @transform_12(%arg0: i32) -> (i32, i32, i32) {
    %c0_i32 = arith.constant 0 : i32
    %c0_i32_0 = arith.constant 0 : i32
    %c0_i32_1 = arith.constant 0 : i32
    %c0_i32_2 = arith.constant 0 : i32
    return %c0_i32, %c0_i32_0, %c0_i32_1 : i32, i32, i32
  }
  func.func @transform_13(%arg0: i32) -> (i32, i32, i32, i32) {
    %c0_i32 = arith.constant 0 : i32
    %c0_i32_0 = arith.constant 0 : i32
    %c0_i32_1 = arith.constant 0 : i32
    %c0_i32_2 = arith.constant 0 : i32
    return %arg0, %c0_i32, %c0_i32_0, %c0_i32_1 : i32, i32, i32, i32
  }
}

</mosaic_0001>

<bundles_post_ra>
// kernel: tpu_custom_call.1
= control target key start
LH: loop header
LB: loop body
LE: loop exit
PB: predicated region body
PF: predicated region fallthrough
CT: control target
= control target key end

     0   :  { %s5024_s25 = smov 0   ;;  %s6136_s0 = inlined_call_operand.vmem [shape: f32[2,20,16], index: 0, kind: input, shape index: {}]   ;;  %s6137_s1 = inlined_call_operand.vmem [shape: f32[20,64], index: 1, kind: input, shape index: {}]   ;;  %s6138_s2 = inlined_call_operand.vmem [shape: bf16[16,64], index: 2, kind: input, shape index: {}]   ;;  %s6139_s3 = inlined_call_operand.vmem [shape: bf16[64,64], index: 3, kind: input, shape index: {}]   ;;  %s6140_s4 = inlined_call_operand.vmem [shape: bf16[128,64], index: 4, kind: input, shape index: {}]   ;;  %s6141_s5 = inlined_call_operand.vmem [shape: f32[128,1], index: 5, kind: input, shape index: {}]   ;;  %s6142_s6 = inlined_call_operand.vmem [shape: f32[3,64], index: 6, kind: input, shape index: {}]   ;;  %s6143_s7 = inlined_call_operand.vmem [shape: f32[64,64], index: 7, kind: input, shape index: {}]   ;;  %s6144_s8 = inlined_call_operand.vmem [shape: bf16[64,256], index: 8, kind: input, shape index: {}]   ;;  %s6145_s9 = inlined_call_operand.vmem [shape: f32[1,256], index: 9, kind: input, shape index: {}]   ;;  %s6146_s10 = inlined_call_operand.vmem [shape: bf16[256,64], index: 10, kind: input, shape index: {}]   ;;  %s6147_s11 = inlined_call_operand.vmem [shape: f32[16,20,64], index: 11, kind: input, shape index: {}]   ;;  %s6148_s12 = inlined_call_operand.vmem [shape: f32[16,1,1], index: 12, kind: input, shape index: {}]   ;;  %s6149_s13 = inlined_call_operand.vmem [shape: f32[2,16,1,1], index: 13, kind: output, shape index: {}]  }
   0x1 LB: > { %s4188_s26 = sadd.s32 4294967295, %s4942_s25   ;;  %p4192_p0 = scmp.ge.s32.totalorder %s4942_s25, 1  ;;  %s4942_s25 = sphi %s5024_s25, %s23_s25  }
   0x2   : > { %p387_p1 = scmp.lt.s32.totalorder %s4942_s25, 3 }
   0x4   : > { %p388_p2 = pnand %p4192_p0, %p387_p1 }
   0x5   : > { %p430_p3 = scmp.lt.s32.totalorder (!%p388_p2), %s4188_s26, 1  ;;  %s4947_s20 = smov (!%p388_p2), 120  }
   0x6   : > { %391 = sbr.rel (%p388_p2) target bundleno = 5978 (0x175a), region = 72  ;;  %s4949_s23 = smov (!%p388_p2), 104  }
   0x7   : > { %s4950_s30 = smov (!%p388_p2), 96   ;;  %s4951_s22 = smov (!%p388_p2), 88  }
   0x8   : > { %s4952_s29 = smov (!%p388_p2), 80   ;;  %s4953_s21 = smov (!%p388_p2), 72  }
   0xb   : > { %v4799_v0 = vld [vmem:[%s6138_s2] sm:$0xff]   ;;  %v4800_v1 = vld [vmem:[%s6139_s3 + $0x18] sm:$0xff]   ;;  %s6151_s26 = smov (!%p430_p3, %s4188_s26), 1  ;;  %vm456_vm0 = vcmask 130048   ;;  %v4801_v7 = vld [vmem:[%s6139_s3 + $0x10] sm:$0xff]   ;;  %vm552_vm1 = vcmask 523264  }
   0xc   : > { %4474 = vmatprep.subr.bf16.mxu0 %v4799_v0  ;;  %4480 = vmatprep.subr.bf16.mxu1 %v4800_v1  ;;  %s4778_s14 = smul.u32 24, %s6151_s26  ;;  %v4802_v8 = vld [vmem:[%s6139_s3 + $0x8] sm:$0xff]   ;;  %v4803_v9 = vld [vmem:[%s6139_s3] sm:$0xff]   ;;  %v4944_v12 = vmov 0   ;;  %v449_v13 = vld [vmem:[%s6137_s1 + $0x10] sm:$0xf] }
   0xd   : > { %4475 = vmatpush3.bf16.msra.mxu0 %v4799_v0  ;;  %4481 = vmatpush3.bf16.msra.mxu1 %v4800_v1  ;;  %v4804_v10 = vld [vmem:[%s6140_s4] sm:$0xff]   ;;  %v448_v20 = vld [vmem:[%s6137_s1 + $0x8] sm:$0xff]  ;;  %v4945_v28 = vmov 0.0   ;;  %vm4946_vm2 = vmmov 0   ;;  %vm880_vm3 = vcmask 64512   ;;  %v4806_v41 = vld [vmem:[%s6140_s4 + $0x10] sm:$0xff]  }
   0xe   : > { %s434_s17 = scalar_lea.vmem %s6136_s0, %s4778_s14  ;;  %4482 = vmatprep.subr.bf16.mxu1 %v4801_v7  ;;  %v623_v11 = vld [vmem:[%s6141_s5] sm:$0xff]  ;;  %4797 = vset.pattern.permute.xlu0 %v4944_v12  ;;  %v4805_v27 = vld [vmem:[%s6140_s4 + $0x8] sm:$0xff]   ;;  %v4807_v42 = vld [vmem:[%s6140_s4 + $0x18] sm:$0xff]   ;;  %vm973_vm4 = vcmask 162816   ;;  %vm980_vm5 = vcmask 158720   ;;  %s4948_s14 = smov 112  }
   0xf   : > { %v440_v2 = vld [vmem:[%s434_s17] sm:$0xff]  ;;  %v441_v3 = vld [vmem:[%s434_s17 + $0x8] sm:$0xff]  ;;  %v442_v4 = vld [vmem:[%s434_s17 + $0x10] sm:$0xf]  ;;  %4798 = vset.pattern.permute.xlu1 %v4944_v12  ;;  %641 = vperm.xlu0 %4797, %v623_v11   ;;  %vm3802_vm6 = vcmask 519168   ;;  %vm3942_vm7 = vcmask 1043456  }
  0x10   : > { %v443_v5 = vpack.c.bf16 %v441_v3, %v440_v2  ;;  %v444_v6 = vpack.c.bf16 %v442_v4, %v442_v4  ;;  %v447_v18 = vld [vmem:[%s6137_s1] sm:$0xff]  ;;  %v4809_v44 = vld [vmem:[%s6140_s4 + $0x28] sm:$0xff]   ;;  %vm4118_vm8 = vcmask 0  }
  0x11   : > { %4483 = vmatpush3.bf16.msra.mxu1 %v4801_v7  ;;  %v4198_v35 = vld [vmem:[%s6142_s6] ss:$0 sm:$0xff]  ;;  %v624_v57 = vld [vmem:[%s6141_s5 + $0x8] sm:$0xff] }
  0x12   : > { %4476 = vmatprep.mubr.msk.bf16.mxu0 %vm456_vm0, %v443_v5  ;;  %4484 = vmatprep.subr.bf16.mxu1 %v4802_v8  ;;  %v4808_v43 = vld [vmem:[%s6140_s4 + $0x20] sm:$0xff]  }
  0x13   : > { %4477 = vmatmul.mubr.msk.bf16.vlgmr.msra.gmra.mxu0 %vm456_vm0, %v444_v6  ;;  %v631_v58 = vld [vmem:[%s6141_s5 + $0x40] sm:$0xff] }
  0x14   : > { %4496 = vmatprep.mubr.msk.bf16.mxu0 %vm552_vm1, %v4804_v10 }
  0x15   : > { %4485 = vmatpush3.bf16.msra.mxu1 %v4802_v8 }
  0x16   : > { %4486 = vmatprep.subr.bf16.mxu1 %v4803_v9 }
  0x19   : > { %4487 = vmatpush3.bf16.msra.mxu1 %v4803_v9 }
  0x1a   : > { %4512 = vmatprep.subr.mxu1 %v4945_v28 }
  0x8a   : > { %v642_v33 = vpop.permute.xlu0 %641 }
  0xd3   : > { %v4478_v14 = vpop.f32.mrf.mxu0 }
  0xd4   : > { %v5065_v15 = vadd.f32 %v4478_v14, %v449_v13 }
  0xd5   : > { %v497_v16 = vpop.f32.mrf.mxu0 }
  0xd6   : > { %v512_v17 = vpack.c.bf16 %v5065_v15, %v5065_v15  ;;  %v5077_v23 = vadd.f32 %v497_v16, %v447_v18 }
  0xd7   : > { %v4479_v19 = vpop.f32.mrf.mxu0 }
  0xd8   : > { %4776 = vmatprep.subr.msk.bf16.mxu0 %vm552_vm1, %v512_v17  ;;  %v557_v21 = vsel %vm552_vm1, %v512_v17, 0 }
  0xd9   : > { %v500_v22 = vpop.f32.mrf.mxu0  ;;  %4493 = vmatpush3.bf16.xpose.msra.mxu0 %v557_v21 }
  0xda   : > { %v5079_v24 = vadd.f32 %v500_v22, %v448_v20  ;;  %v4810_v22 = vld [vmem:[%s6140_s4 + $0x30] sm:$0xff]  }
  0xdc   : > { %v511_v25 = vpack.c.bf16 %v5079_v24, %v5077_v23 }
  0xde   : > { %4488 = vmatprep.mubr.msk.bf16.mxu1 %vm552_vm1, %v511_v25  ;;  %4777 = vmatprep.subr.msk.bf16.mxu0 %vm552_vm1, %v511_v25  ;;  %v554_v26 = vsel %vm552_vm1, %v511_v25, 0  ;;  %v4811_v25 = vld [vmem:[%s6140_s4 + $0x38] sm:$0xff]  }
  0xdf   : > { %4489 = vmatmul.mubr.msk.bf16.vlgmr.msra.gmra.mxu1 %vm552_vm1, %v512_v17 }
  0xe0   : > { %4514 = vmatprep.mubr.msk.f32.mxu1 %vm4946_vm2, %v4945_v28 }
  0xe1   : > { %4495 = vmatpush3.bf16.xpose.msra.mxu0 %v554_v26 }
  0xe2   : > { %4567 = vmatprep.subr.mxu0 %v4945_v28 }
  0xe8   : > { %4497 = vmatmul.mubr.msk.bf16.vlgmr.msra.gmra.mxu0 %vm552_vm1, %v4805_v27 }
  0xe9   : > { %4500 = vmatprep.mubr.msk.bf16.mxu0 %vm552_vm1, %v4806_v41 }
  0xf0   : > { %4501 = vmatmul.mubr.msk.bf16.gmra.mxu0 %vm552_vm1, %v4807_v42 }
  0xf1   : > { %4504 = vmatprep.mubr.msk.bf16.mxu0 %vm552_vm1, %v4808_v43 }
  0xf8   : > { %4505 = vmatmul.mubr.msk.bf16.gmra.mxu0 %vm552_vm1, %v4809_v44 }
  0xf9   : > { %4508 = vmatprep.mubr.msk.bf16.mxu0 %vm552_vm1, %v4810_v22 }
 0x100   : > { %4509 = vmatmul.mubr.msk.bf16.gmra.mxu0 %vm552_vm1, %v4811_v25 }
 0x101   : > { %4569 = vmatprep.mubr.msk.f32.mxu0 %vm4946_vm2, %v4945_v28 }
 0x19f   : > { %v4490_v29 = vpop.f32.mrf.mxu1 }
 0x1a0   : > { %v5113_v40 = vadd.f32 %v4490_v29, %v4198_v35 }
 0x1a1   : > { %v593_v30 = vpop.f32.mrf.mxu1 }
 0x1a2   : > { %v5100_v37 = vadd.f32 %v4198_v35, %v593_v30 }
 0x1a3   : > { %v4491_v31 = vpop.f32.mrf.mxu1 }
 0x1a5   : > { %v596_v38 = vpop.f32.mrf.mxu1 }
 0x1a6   : > { %v5107_v39 = vadd.f32 %v4198_v35, %v596_v38 }
 0x1a8   : > { %v5095_v32 = vpop.f32.mrf.mxu0 }
 0x1aa   : > { %v817_v34 = vpop.f32.mrf.mxu0 }
 0x1ab   : > { %v818_v36 = vadd.f32 %v817_v34, %v642_v33 }
 0x1ac   : > { %v5146_v59 = vpop.f32.mrf.mxu0 }
 0x1ad   : > { %4513 = vmatpush3.msra.mxu1 %v818_v36 }
 0x1ae   : > { %4515 = vmatmul.mubr.msk.f32.vlgmr.msra.gmra.mxu1 %vm880_vm3, %v5100_v37  ;;  %4523 = vmatprep.subr.mxu1 %v4945_v28  ;;  %v820_v60 = vpop.f32.mrf.mxu0 }
 0x1af   : > { %4517 = vmatprep.mubr.msk.f32.mxu1 %vm4946_vm2, %v4945_v28 }
 0x1b0   : > { %v5148_v61 = vpop.f32.mrf.mxu0 }
 0x1b2   : > { %4518 = vmatmul.mubr.msk.f32.gmra.mxu1 %vm880_vm3, %v5107_v39  ;;  %v5150_v62 = vpop.f32.mrf.mxu0 }
 0x1b3   : > { %4520 = vmatprep.mubr.msk.f32.mxu1 %vm4946_vm2, %v4945_v28 }
 0x1b4   : > { %v5152_v63 = vpop.f32.mrf.mxu0 }
 0x1b6   : > { %4521 = vmatmul.mubr.msk.f32.gmra.mxu1 %vm880_vm3, %v5113_v40  ;;  %v5154_v2 = vpop.f32.mrf.mxu0 }
 0x1b7   : > { %4525 = vmatprep.mubr.msk.f32.mxu1 %vm4946_vm2, %v4945_v28 }
 0x1b8   : > { %v5156_v6 = vpop.f32.mrf.mxu0 }
 0x1ba   : > { %v849_v10 = vpop.f32.mrf.mxu0 }
 0x26e   : > { %v956_v45 = vpop.f32.mrf.mxu1 }
 0x26f   : > { %v970_v46 = vmul.f32 0.35355338, %v956_v45  ;;  %v1100_v45 = vld [vmem:[%s6143_s7] sm:$0xff] }
 0x270   : > { %v4516_v47 = vpop.f32.mrf.mxu1  ;;  %4568 = vmatpush3.msra.mxu0 %v1100_v45 }
 0x271   : > { %v974_v48 = vsel %vm973_vm4, %v970_v46, -inf  ;;  %4589 = vmatprep.subr.mxu0 %v4945_v28 }
 0x272   : > { %975 = vmax.xlane.f32.xlu0 %v974_v48  ;;  %v961_v49 = vpop.f32.mrf.mxu1 }
 0x273   : > { %v971_v50 = vmul.f32 0.35355338, %v961_v49 }
 0x274   : > { %v4519_v51 = vpop.f32.mrf.mxu1 }
 0x275   : > { %v977_v52 = vsel %vm973_vm4, %v971_v50, -inf }
 0x276   : > { %978 = vmax.xlane.f32.xlu1 %v977_v52  ;;  %v966_v53 = vpop.f32.mrf.mxu1 }
 0x277   : > { %v972_v54 = vmul.f32 0.35355338, %v966_v53 }
 0x278   : > { %v4522_v55 = vpop.f32.mrf.mxu1 }
 0x279   : > { %v981_v56 = vsel %vm980_vm5, %v972_v54, -inf }
 0x27a   : > { %982 = vmax.xlane.f32.xlu1 %v981_v56 }
 0x288   : > { %646 = vperm.xlu0 %4797, %v624_v57  }
 0x28b   : > { %681 = vperm.xlu1 %4798, %v631_v58  }
 0x28f   : > { %1101 = vrot.lane.b32.xlu1 %v5100_v37, %s4947_s20 }
 0x2fb   : > { %v976_v0 = vpop.xlane.xlu0 %975 }
 0x2fc   : > { %v984_v1 = vsub.f32 %v970_v46, %v976_v0 }
 0x2fe   : > { %v987_v3 = vmul.f32 1.442695, %v984_v1 }
 0x2ff   : > { %v979_v4 = vpop.xlane.xlu1 %978 }
 0x300   : > { %4840 = vpow2.f32 %v987_v3  ;;  %v985_v5 = vsub.f32 %v971_v50, %v979_v4 }
 0x302   : > { %v989_v7 = vmul.f32 1.442695, %v985_v5 }
 0x303   : > { %v983_v8 = vpop.xlane.xlu1 %982  ;;  %v647_v31 = vpop.permute.xlu0 %646 }
 0x304   : > { %4842 = vpow2.f32 %v989_v7  ;;  %v986_v9 = vsub.f32 %v972_v54, %v983_v8  ;;  %v821_v35 = vadd.f32 %v820_v60, %v647_v31 }
 0x306   : > { %v991_v11 = vmul.f32 1.442695, %v986_v9 }
 0x307   : > { %v682_v13 = vpop.permute.xlu1 %681 }
 0x308   : > { %4844 = vpow2.f32 %v991_v11  ;;  %v850_v14 = vadd.f32 %v849_v10, %v682_v13 }
 0x30a   : > { %4524 = vmatpush3.xpose.msk.msra.mxu1 %vm973_vm4, %v850_v14 }
 0x30b   : > { %4534 = vmatprep.subr.mxu1 %v4945_v28  ;;  %v1102_v26 = vpop.permute.xlu1 %1101 }
 0x30d   : > { %v4841_v16 = vpop.eup %4840 }
 0x30e   : > { %v993_v17 = vsel %vm973_vm4, %v4841_v16, 0.0 }
 0x30f   : > { %994 = vadd.xlane.f32.xlu1 %v993_v17 }
 0x311   : > { %v4843_v18 = vpop.eup %4842 }
 0x312   : > { %v996_v19 = vsel %vm973_vm4, %v4843_v18, 0.0 }
 0x313   : > { %997 = vadd.xlane.f32.xlu1 %v996_v19 }
 0x315   : > { %v4845_v20 = vpop.eup %4844 }
 0x316   : > { %v999_v21 = vsel %vm980_vm5, %v4845_v20, 0.0 }
 0x317   : > { %1000 = vadd.xlane.f32.xlu1 %v999_v21 }
 0x328   : > { %1103 = vrot.lane.b32.xlu1 %v5107_v39, %s4947_s20 }
 0x32c   : > { %1105 = vrot.lane.b32.xlu1 %v5113_v40, %s4947_s20 }
 0x398   : > { %v995_v27 = vpop.xlane.xlu1 %994 }
 0x399   : > { %4846 = vrcp.f32 %v995_v27 }
 0x39c   : > { %v998_v29 = vpop.xlane.xlu1 %997 }
 0x39d   : > { %4848 = vrcp.f32 %v998_v29 }
 0x3a0   : > { %v1001_v30 = vpop.xlane.xlu1 %1000 }
 0x3a1   : > { %4850 = vrcp.f32 %v1001_v30 }
 0x3a4   : > { %v1104_v43 = vpop.permute.xlu1 %1103 }
 0x3a6   : > { %v4847_v33 = vpop.eup %4846 }
 0x3a7   : > { %v1005_v34 = vmul.f32 %v4847_v33, %v4841_v16  ;;  %v632_v33 = vld [vmem:[%s6141_s5 + $0x48] sm:$0xff] }
 0x3a8   : > { %v1106_v44 = vpop.permute.xlu1 %1105 }
 0x3a9   : > { %4526 = vmatmul.mubr.msk.f32.vlgmr.msra.gmra.mxu1 %vm973_vm4, %v1005_v34 }
 0x3aa   : > { %v4849_v36 = vpop.eup %4848  ;;  %4535 = vmatpush3.msra.mxu1 %v821_v35  ;;  %4528 = vmatprep.mubr.msk.f32.mxu1 %vm4946_vm2, %v4945_v28 }
 0x3ab   : > { %v1006_v38 = vmul.f32 %v4849_v36, %v4843_v18  ;;  %4545 = vmatprep.subr.mxu1 %v4945_v28  ;;  %v5212_v18 = vpop.f32.mrf.mxu0 }
 0x3ad   : > { %4529 = vmatmul.mubr.msk.f32.gmra.mxu1 %vm973_vm4, %v1006_v38  ;;  %v852_v21 = vpop.f32.mrf.mxu0 }
 0x3ae   : > { %v4851_v41 = vpop.eup %4850  ;;  %4531 = vmatprep.mubr.msk.f32.mxu1 %vm4946_vm2, %v4945_v28 }
 0x3af   : > { %v1007_v42 = vmul.f32 %v4851_v41, %v4845_v20  ;;  %v5216_v25 = vpop.f32.mrf.mxu0  ;;  %v625_v41 = vld [vmem:[%s6141_s5 + $0x10] sm:$0xff] }
 0x3b1   : > { %4532 = vmatmul.mubr.msk.f32.gmra.mxu1 %vm973_vm4, %v1007_v42  ;;  %v5219_v29 = vpop.f32.mrf.mxu0 }
 0x3b2   : > { %4536 = vmatprep.mubr.msk.f32.mxu1 %vm4946_vm2, %v4945_v28 }
 0x3b3   : > { %v5221_v30 = vpop.f32.mrf.mxu0 }
 0x3b5   : > { %4537 = vmatmul.mubr.msk.f32.vlgmr.msra.gmra.mxu1 %vm880_vm3, %v1102_v26  ;;  %v5223_v31 = vpop.f32.mrf.mxu0 }
 0x3b6   : > { %4539 = vmatprep.mubr.msk.f32.mxu1 %vm4946_vm2, %v4945_v28 }
 0x3b9   : > { %4540 = vmatmul.mubr.msk.f32.gmra.mxu1 %vm880_vm3, %v1104_v43 }
 0x3ba   : > { %4542 = vmatprep.mubr.msk.f32.mxu1 %vm4946_vm2, %v4945_v28 }
 0x3bd   : > { %4543 = vmatmul.mubr.msk.f32.gmra.mxu1 %vm880_vm3, %v1106_v44 }
 0x3be   : > { %4547 = vmatprep.mubr.msk.f32.mxu1 %vm4946_vm2, %v4945_v28 }
 0x469   : > { %v1086_v46 = vpop.f32.mrf.mxu1 }
 0x46a   : > { %4570 = vmatmul.mubr.msk.f32.vlgmr.msra.gmra.mxu0 %vm880_vm3, %v1086_v46 }
 0x46b   : > { %v4527_v47 = vpop.f32.mrf.mxu1  ;;  %4572 = vmatprep.mubr.msk.f32.mxu0 %vm4946_vm2, %v4945_v28 }
 0x46d   : > { %v1091_v48 = vpop.f32.mrf.mxu1 }
 0x46e   : > { %4573 = vmatmul.mubr.msk.f32.gmra.mxu0 %vm880_vm3, %v1091_v48 }
 0x46f   : > { %v4530_v49 = vpop.f32.mrf.mxu1  ;;  %4575 = vmatprep.mubr.msk.f32.mxu0 %vm4946_vm2, %v4945_v28 }
 0x471   : > { %v1096_v50 = vpop.f32.mrf.mxu1 }
 0x472   : > { %4576 = vmatmul.mubr.msk.f32.gmra.mxu0 %vm880_vm3, %v1096_v50 }
 0x473   : > { %v4533_v51 = vpop.f32.mrf.mxu1  ;;  %4591 = vmatprep.mubr.msk.f32.mxu0 %vm4946_vm2, %v4945_v28 }
 0x474   : > { %v1321_v51 = vld [vmem:[%s6143_s7 + $0x8] sm:$0xff] }
 0x475   : > { %v1179_v52 = vpop.f32.mrf.mxu1 }
 0x476   : > { %v1193_v53 = vmul.f32 0.35355338, %v1179_v52 }
 0x477   : > { %v4538_v54 = vpop.f32.mrf.mxu1 }
 0x478   : > { %v1196_v55 = vsel %vm973_vm4, %v1193_v53, -inf }
 0x479   : > { %1197 = vmax.xlane.f32.xlu1 %v1196_v55  ;;  %v1184_v56 = vpop.f32.mrf.mxu1 }
 0x47a   : > { %v1194_v57 = vmul.f32 0.35355338, %v1184_v56 }
 0x47b   : > { %v4541_v58 = vpop.f32.mrf.mxu1 }
 0x47c   : > { %v1199_v60 = vsel %vm973_vm4, %v1194_v57, -inf }
 0x47d   : > { %1200 = vmax.xlane.f32.xlu0 %v1199_v60  ;;  %v1189_v0 = vpop.f32.mrf.mxu1 }
 0x47e   : > { %v1195_v1 = vmul.f32 0.35355338, %v1189_v0 }
 0x47f   : > { %v4544_v3 = vpop.f32.mrf.mxu1 }
 0x480   : > { %v1202_v4 = vsel %vm980_vm5, %v1195_v1, -inf }
 0x481   : > { %1203 = vmax.xlane.f32.xlu1 %v1202_v4 }
 0x502   : > { %v1198_v5 = vpop.xlane.xlu1 %1197 }
 0x503   : > { %v1205_v7 = vsub.f32 %v1193_v53, %v1198_v5 }
 0x505   : > { %v1208_v8 = vmul.f32 1.442695, %v1205_v7 }
 0x506   : > { %v1201_v9 = vpop.xlane.xlu0 %1200 }
 0x507   : > { %4852 = vpow2.f32 %v1208_v8  ;;  %v1206_v10 = vsub.f32 %v1194_v57, %v1201_v9 }
 0x509   : > { %v1210_v11 = vmul.f32 1.442695, %v1206_v10 }
 0x50a   : > { %v1204_v13 = vpop.xlane.xlu1 %1203 }
 0x50b   : > { %4854 = vpow2.f32 %v1210_v11  ;;  %v1207_v14 = vsub.f32 %v1195_v1, %v1204_v13 }
 0x50d   : > { %v1212_v16 = vmul.f32 1.442695, %v1207_v14 }
 0x50f   : > { %4856 = vpow2.f32 %v1212_v16 }
 0x514   : > { %v4853_v17 = vpop.eup %4852 }
 0x515   : > { %v1214_v19 = vsel %vm973_vm4, %v4853_v17, 0.0 }
 0x516   : > { %1215 = vadd.xlane.f32.xlu0 %v1214_v19 }
 0x518   : > { %v4855_v20 = vpop.eup %4854 }
 0x519   : > { %v1217_v22 = vsel %vm973_vm4, %v4855_v20, 0.0 }
 0x51a   : > { %1218 = vadd.xlane.f32.xlu1 %v1217_v22 }
 0x51c   : > { %v4857_v26 = vpop.eup %4856 }
 0x51d   : > { %v1220_v27 = vsel %vm980_vm5, %v4857_v26, 0.0 }
 0x51e   : > { %1221 = vadd.xlane.f32.xlu0 %v1220_v27 }
 0x52a   : > { %v5228_v34 = vpop.f32.mrf.mxu0 }
 0x52b   : > { %686 = vperm.xlu1 %4798, %v632_v33  }
 0x52c   : > { %v4571_v35 = vpop.f32.mrf.mxu0 }
 0x52e   : > { %v5230_v36 = vpop.f32.mrf.mxu0 }
 0x52f   : > { %1500 = vrot.lane.b32.xlu1 %v5100_v37, %s4948_s14 }
 0x530   : > { %v4574_v38 = vpop.f32.mrf.mxu0 }
 0x532   : > { %v5236_v42 = vpop.f32.mrf.mxu0 }
 0x533   : > { %1502 = vrot.lane.b32.xlu1 %v5107_v39, %s4948_s14 }
 0x534   : > { %v4577_v43 = vpop.f32.mrf.mxu0  ;;  %651 = vperm.xlu0 %4797, %v625_v41  }
 0x538   : > { %1504 = vrot.lane.b32.xlu0 %v5113_v40, %s4948_s14 }
 0x59f   : > { %v1216_v44 = vpop.xlane.xlu0 %1215 }
 0x5a0   : > { %4858 = vrcp.f32 %v1216_v44 }
 0x5a3   : > { %v1219_v45 = vpop.xlane.xlu1 %1218 }
 0x5a4   : > { %4860 = vrcp.f32 %v1219_v45 }
 0x5a7   : > { %v1222_v46 = vpop.xlane.xlu0 %1221  ;;  %v687_v47 = vpop.permute.xlu1 %686 }
 0x5a8   : > { %4862 = vrcp.f32 %v1222_v46  ;;  %v853_v48 = vadd.f32 %v852_v21, %v687_v47 }
 0x5aa   : > { %4546 = vmatpush3.xpose.msk.msra.mxu1 %vm973_vm4, %v853_v48 }
 0x5ab   : > { %4556 = vmatprep.subr.mxu1 %v4945_v28 }
 0x5ad   : > { %v4859_v49 = vpop.eup %4858 }
 0x5ae   : > { %v1226_v50 = vmul.f32 %v4859_v49, %v4853_v17 }
 0x5af   : > { %v652_v56 = vpop.permute.xlu0 %651 }
 0x5b0   : > { %4548 = vmatmul.mubr.msk.f32.vlgmr.msra.gmra.mxu1 %vm973_vm4, %v1226_v50  ;;  %v826_v57 = vadd.f32 %v5095_v32, %v652_v56  ;;  %v1501_v32 = vpop.permute.xlu1 %1500 }
 0x5b1   : > { %v4861_v52 = vpop.eup %4860  ;;  %4550 = vmatprep.mubr.msk.f32.mxu1 %vm4946_vm2, %v4945_v28  ;;  %4557 = vmatpush3.msra.mxu1 %v1321_v51 }
 0x5b2   : > { %v1227_v53 = vmul.f32 %v4861_v52, %v4855_v20  ;;  %4578 = vmatprep.subr.mxu1 %v4945_v28 }
 0x5b3   : > { %v1505_v7 = vpop.permute.xlu0 %1504 }
 0x5b4   : > { %4551 = vmatmul.mubr.msk.f32.gmra.mxu1 %vm973_vm4, %v1227_v53  ;;  %v1503_v5 = vpop.permute.xlu1 %1502  ;;  %v626_v53 = vld [vmem:[%s6141_s5 + $0x18] sm:$0xff] }
 0x5b5   : > { %v4863_v54 = vpop.eup %4862  ;;  %4553 = vmatprep.mubr.msk.f32.mxu1 %vm4946_vm2, %v4945_v28 }
 0x5b6   : > { %v1228_v55 = vmul.f32 %v4863_v54, %v4857_v26  ;;  %v633_v54 = vld [vmem:[%s6141_s5 + $0x50] sm:$0xff] }
 0x5b8   : > { %4554 = vmatmul.mubr.msk.f32.gmra.mxu1 %vm973_vm4, %v1228_v55 }
 0x5b9   : > { %4558 = vmatprep.mubr.msk.f32.mxu1 %vm4946_vm2, %v4945_v28 }
 0x670   : > { %v1307_v58 = vpop.f32.mrf.mxu1 }
 0x671   : > { %4559 = vmatmul.mubr.msk.f32.vlgmr.msra.gmra.mxu1 %vm880_vm3, %v1307_v58 }
 0x672   : > { %4579 = vmatpush3.msra.mxu1 %v826_v57  ;;  %v4549_v60 = vpop.f32.mrf.mxu1  ;;  %4561 = vmatprep.mubr.msk.f32.mxu1 %vm4946_vm2, %v4945_v28 }
 0x673   : > { %4600 = vmatprep.subr.mxu1 %v4945_v28 }
 0x674   : > { %v1312_v0 = vpop.f32.mrf.mxu1 }
 0x675   : > { %4562 = vmatmul.mubr.msk.f32.gmra.mxu1 %vm880_vm3, %v1312_v0 }
 0x676   : > { %v4552_v1 = vpop.f32.mrf.mxu1  ;;  %4564 = vmatprep.mubr.msk.f32.mxu1 %vm4946_vm2, %v4945_v28 }
 0x678   : > { %v1317_v3 = vpop.f32.mrf.mxu1 }
 0x679   : > { %4565 = vmatmul.mubr.msk.f32.gmra.mxu1 %vm880_vm3, %v1317_v3 }
 0x67a   : > { %v4555_v4 = vpop.f32.mrf.mxu1  ;;  %4580 = vmatprep.mubr.msk.f32.mxu1 %vm4946_vm2, %v4945_v28 }
 0x67d   : > { %4581 = vmatmul.mubr.msk.f32.vlgmr.msra.gmra.mxu1 %vm880_vm3, %v1501_v32 }
 0x67e   : > { %4583 = vmatprep.mubr.msk.f32.mxu1 %vm4946_vm2, %v4945_v28 }
 0x681   : > { %4584 = vmatmul.mubr.msk.f32.gmra.mxu1 %vm880_vm3, %v1503_v5 }
 0x682   : > { %4586 = vmatprep.mubr.msk.f32.mxu1 %vm4946_vm2, %v4945_v28 }
 0x685   : > { %4587 = vmatmul.mubr.msk.f32.gmra.mxu1 %vm880_vm3, %v1505_v7 }
 0x686   : > { %4602 = vmatprep.mubr.msk.f32.mxu1 %vm4946_vm2, %v4945_v28 }
 0x731   : > { %v5275_v8 = vpop.f32.mrf.mxu1 }
 0x733   : > { %v4560_v9 = vpop.f32.mrf.mxu1 }
 0x735   : > { %v5277_v10 = vpop.f32.mrf.mxu1 }
 0x737   : > { %v4563_v11 = vpop.f32.mrf.mxu1 }
 0x739   : > { %v5279_v13 = vpop.f32.mrf.mxu1 }
 0x73b   : > { %v4566_v14 = vpop.f32.mrf.mxu1 }
 0x73d   : > { %v1578_v16 = vpop.f32.mrf.mxu1 }
 0x73e   : > { %v1592_v17 = vmul.f32 0.35355338, %v1578_v16 }
 0x73f   : > { %v4582_v19 = vpop.f32.mrf.mxu1 }
 0x740   : > { %v1595_v20 = vsel %vm973_vm4, %v1592_v17, -inf }
 0x741   : > { %1596 = vmax.xlane.f32.xlu1 %v1595_v20  ;;  %v1583_v21 = vpop.f32.mrf.mxu1 }
 0x742   : > { %v1593_v22 = vmul.f32 0.35355338, %v1583_v21  ;;  %v1720_v21 = vld [vmem:[%s6143_s7 + $0x10] sm:$0xff] }
 0x743   : > { %v4585_v26 = vpop.f32.mrf.mxu1  ;;  %4601 = vmatpush3.msra.mxu1 %v1720_v21  ;;  %v627_v21 = vld [vmem:[%s6141_s5 + $0x20] sm:$0xff] }
 0x744   : > { %v1598_v27 = vsel %vm973_vm4, %v1593_v22, -inf  ;;  %4622 = vmatprep.subr.mxu1 %v4945_v28 }
 0x745   : > { %1599 = vmax.xlane.f32.xlu0 %v1598_v27  ;;  %v1588_v33 = vpop.f32.mrf.mxu1 }
 0x746   : > { %v1594_v35 = vmul.f32 0.35355338, %v1588_v33 }
 0x747   : > { %v4588_v38 = vpop.f32.mrf.mxu1 }
 0x748   : > { %v1601_v41 = vsel %vm980_vm5, %v1594_v35, -inf }
 0x749   : > { %1602 = vmax.xlane.f32.xlu0 %v1601_v41 }
 0x7ca   : > { %v1597_v43 = vpop.xlane.xlu1 %1596 }
 0x7cb   : > { %v1604_v44 = vsub.f32 %v1592_v17, %v1597_v43 }
 0x7cd   : > { %v1607_v45 = vmul.f32 1.442695, %v1604_v44 }
 0x7ce   : > { %v1600_v46 = vpop.xlane.xlu0 %1599 }
 0x7cf   : > { %4864 = vpow2.f32 %v1607_v45  ;;  %v1605_v47 = vsub.f32 %v1593_v22, %v1600_v46 }
 0x7d1   : > { %v1609_v48 = vmul.f32 1.442695, %v1605_v47 }
 0x7d2   : > { %v1603_v55 = vpop.xlane.xlu0 %1602 }
 0x7d3   : > { %4866 = vpow2.f32 %v1609_v48  ;;  %v1606_v56 = vsub.f32 %v1594_v35, %v1603_v55  ;;  %v1487_v55 = vadd.f32 %v5228_v34, %v5275_v8 }
 0x7d5   : > { %v1611_v57 = vmul.f32 1.442695, %v1606_v56 }
 0x7d7   : > { %4868 = vpow2.f32 %v1611_v57 }
 0x7dc   : > { %v4865_v49 = vpop.eup %4864 }
 0x7dd   : > { %v1613_v50 = vsel %vm973_vm4, %v4865_v49, 0.0 }
 0x7de   : > { %1614 = vadd.xlane.f32.xlu1 %v1613_v50 }
 0x7e0   : > { %v4867_v51 = vpop.eup %4866 }
 0x7e1   : > { %v1616_v52 = vsel %vm973_vm4, %v4867_v51, 0.0 }
 0x7e2   : > { %1617 = vadd.xlane.f32.xlu0 %v1616_v52 }
 0x7e4   : > { %v4869_v58 = vpop.eup %4868 }
 0x7e5   : > { %v1619_v60 = vsel %vm980_vm5, %v4869_v58, 0.0 }
 0x7ef   : > { %656 = vperm.xlu1 %4798, %v626_v53  }
 0x7f8   : > { %691 = vperm.xlu0 %4797, %v633_v54   ;;  %v634_v54 = vld [vmem:[%s6141_s5 + $0x58] sm:$0xff] }
 0x7fc   : > { %1815 = vrot.lane.b32.xlu0 %v5107_v39, %s4949_s23 }
 0x813   : > { %1620 = vadd.xlane.f32.xlu1 %v1619_v60  ;;  %v1492_v60 = vadd.f32 %v5230_v36, %v5277_v10 }
 0x824   : > { %1813 = vrot.lane.b32.xlu1 %v5100_v37, %s4949_s23 }
 0x828   : > { %1817 = vrot.lane.b32.xlu1 %v5113_v40, %s4949_s23 }
 0x867   : > { %v1615_v0 = vpop.xlane.xlu1 %1614 }
 0x868   : > { %4870 = vrcp.f32 %v1615_v0 }
 0x86b   : > { %v1618_v1 = vpop.xlane.xlu0 %1617  ;;  %v657_v5 = vpop.permute.xlu1 %656 }
 0x86c   : > { %4872 = vrcp.f32 %v1618_v1  ;;  %v829_v9 = vadd.f32 %v5146_v59, %v657_v5 }
 0x873   : > { %v692_v3 = vpop.permute.xlu0 %691 }
 0x874   : > { %v858_v32 = vadd.f32 %v5156_v6, %v692_v3 }
 0x875   : > { %v4871_v4 = vpop.eup %4870 }
 0x876   : > { %v1625_v7 = vmul.f32 %v4871_v4, %v4865_v49  ;;  %4590 = vmatpush3.xpose.msk.msra.mxu0 %vm973_vm4, %v858_v32 }
 0x877   : > { %4611 = vmatprep.subr.mxu0 %v4945_v28  ;;  %v1816_v19 = vpop.permute.xlu0 %1815 }
 0x879   : > { %v4873_v11 = vpop.eup %4872  ;;  %4592 = vmatmul.mubr.msk.f32.vlgmr.msra.gmra.mxu0 %vm973_vm4, %v1625_v7 }
 0x87a   : > { %4612 = vmatpush3.msra.mxu0 %v829_v9  ;;  %4594 = vmatprep.mubr.msk.f32.mxu0 %vm4946_vm2, %v4945_v28  ;;  %v1626_v14 = vmul.f32 %v4873_v11, %v4867_v51 }
 0x87b   : > { %4633 = vmatprep.subr.mxu0 %v4945_v28 }
 0x87d   : > { %4595 = vmatmul.mubr.msk.f32.gmra.mxu0 %vm973_vm4, %v1626_v14 }
 0x87e   : > { %4597 = vmatprep.mubr.msk.f32.mxu0 %vm4946_vm2, %v4945_v28 }
 0x89c   : > { %v1621_v6 = vpop.xlane.xlu1 %1620 }
 0x89d   : > { %4874 = vrcp.f32 %v1621_v6 }
 0x8a0   : > { %v1814_v59 = vpop.permute.xlu1 %1813 }
 0x8a4   : > { %v1818_v20 = vpop.permute.xlu1 %1817 }
 0x8aa   : > { %v4875_v16 = vpop.eup %4874 }
 0x8ab   : > { %v1627_v17 = vmul.f32 %v4875_v16, %v4869_v58 }
 0x8ad   : > { %4598 = vmatmul.mubr.msk.f32.gmra.mxu0 %vm973_vm4, %v1627_v17 }
 0x8ae   : > { %4613 = vmatprep.mubr.msk.f32.mxu0 %vm4946_vm2, %v4945_v28 }
 0x8b1   : > { %4614 = vmatmul.mubr.msk.f32.vlgmr.msra.gmra.mxu0 %vm880_vm3, %v1814_v59 }
 0x8b2   : > { %4616 = vmatprep.mubr.msk.f32.mxu0 %vm4946_vm2, %v4945_v28 }
 0x8b5   : > { %4617 = vmatmul.mubr.msk.f32.gmra.mxu0 %vm880_vm3, %v1816_v19 }
 0x8b6   : > { %4619 = vmatprep.mubr.msk.f32.mxu0 %vm4946_vm2, %v4945_v28 }
 0x8b9   : > { %4620 = vmatmul.mubr.msk.f32.gmra.mxu0 %vm880_vm3, %v1818_v20 }
 0x8ba   : > { %4635 = vmatprep.mubr.msk.f32.mxu0 %vm4946_vm2, %v4945_v28 }
 0x939   : > { %v1706_v22 = vpop.f32.mrf.mxu0 }
 0x93a   : > { %4603 = vmatmul.mubr.msk.f32.vlgmr.msra.gmra.mxu1 %vm880_vm3, %v1706_v22 }
 0x93b   : > { %v4593_v26 = vpop.f32.mrf.mxu0  ;;  %4605 = vmatprep.mubr.msk.f32.mxu1 %vm4946_vm2, %v4945_v28 }
 0x93d   : > { %v1711_v27 = vpop.f32.mrf.mxu0 }
 0x93e   : > { %4606 = vmatmul.mubr.msk.f32.gmra.mxu1 %vm880_vm3, %v1711_v27 }
 0x93f   : > { %v4596_v33 = vpop.f32.mrf.mxu0  ;;  %4608 = vmatprep.mubr.msk.f32.mxu1 %vm4946_vm2, %v4945_v28 }
 0x96d   : > { %v1716_v35 = vpop.f32.mrf.mxu0 }
 0x96e   : > { %4609 = vmatmul.mubr.msk.f32.gmra.mxu1 %vm880_vm3, %v1716_v35 }
 0x96f   : > { %v4599_v38 = vpop.f32.mrf.mxu0  ;;  %4624 = vmatprep.mubr.msk.f32.mxu1 %vm4946_vm2, %v4945_v28 }
 0x971   : > { %v1891_v41 = vpop.f32.mrf.mxu0 }
 0x972   : > { %v1905_v43 = vmul.f32 0.35355338, %v1891_v41 }
 0x973   : > { %v4615_v44 = vpop.f32.mrf.mxu0 }
 0x974   : > { %v1908_v45 = vsel %vm973_vm4, %v1905_v43, -inf }
 0x975   : > { %1909 = vmax.xlane.f32.xlu0 %v1908_v45  ;;  %v1896_v46 = vpop.f32.mrf.mxu0 }
 0x976   : > { %v1906_v47 = vmul.f32 0.35355338, %v1896_v46 }
 0x977   : > { %v4618_v48 = vpop.f32.mrf.mxu0 }
 0x978   : > { %v1911_v49 = vsel %vm973_vm4, %v1906_v47, -inf }
 0x979   : > { %1912 = vmax.xlane.f32.xlu1 %v1911_v49  ;;  %v1901_v50 = vpop.f32.mrf.mxu0 }
 0x97a   : > { %v1907_v51 = vmul.f32 0.35355338, %v1901_v50  ;;  %v2033_v50 = vld [vmem:[%s6143_s7 + $0x18] sm:$0xff] }
 0x97b   : > { %v4621_v52 = vpop.f32.mrf.mxu0  ;;  %4634 = vmatpush3.msra.mxu0 %v2033_v50 }
 0x97c   : > { %v1914_v53 = vsel %vm980_vm5, %v1907_v51, -inf  ;;  %4655 = vmatprep.subr.mxu0 %v4945_v28 }
 0x97d   : > { %1915 = vmax.xlane.f32.xlu0 %v1914_v53 }
 0x98a   : > { %696 = vperm.xlu1 %4798, %v634_v54  }
 0x9fa   : > { %v1796_v56 = vpop.f32.mrf.mxu1 }
 0x9fb   : > { %v5340_v57 = vadd.f32 %v1796_v56, %v1487_v55 }
 0x9fc   : > { %v4604_v58 = vpop.f32.mrf.mxu1 }
 0x9fe   : > { %v1910_v0 = vpop.xlane.xlu0 %1909  ;;  %v1801_v1 = vpop.f32.mrf.mxu1 }
 0x9ff   : > { %v1917_v3 = vsub.f32 %v1905_v43, %v1910_v0  ;;  %v5344_v32 = vadd.f32 %v1801_v1, %v1492_v60 }
 0xa00   : > { %v4607_v4 = vpop.f32.mrf.mxu1 }
 0xa01   : > { %v1920_v5 = vmul.f32 1.442695, %v1917_v3 }
 0xa02   : > { %v1913_v7 = vpop.xlane.xlu1 %1912 }
 0xa03   : > { %4876 = vpow2.f32 %v1920_v5  ;;  %v1918_v9 = vsub.f32 %v1906_v47, %v1913_v7 }
 0xa05   : > { %v1922_v11 = vmul.f32 1.442695, %v1918_v9 }
 0xa06   : > { %v697_v14 = vpop.permute.xlu1 %696  ;;  %v1916_v34 = vpop.xlane.xlu0 %1915 }
 0xa07   : > { %4878 = vpow2.f32 %v1922_v11  ;;  %v861_v8 = vadd.f32 %v5212_v18, %v697_v14  ;;  %v1919_v6 = vsub.f32 %v1907_v51, %v1916_v34  ;;  %v1497_v18 = vadd.f32 %v5236_v42, %v5279_v13 }
 0xa09   : > { %v1924_v16 = vmul.f32 1.442695, %v1919_v6  ;;  %4623 = vmatpush3.xpose.msk.msra.mxu1 %vm973_vm4, %v861_v8 }
 0xa0a   : > { %4644 = vmatprep.subr.mxu1 %v4945_v28 }
 0xa0b   : > { %4880 = vpow2.f32 %v1924_v16 }
 0xa10   : > { %v4877_v36 = vpop.eup %4876 }
 0xa11   : > { %v1926_v10 = vsel %vm973_vm4, %v4877_v36, 0.0 }
 0xa12   : > { %1927 = vadd.xlane.f32.xlu0 %v1926_v10 }
 0xa14   : > { %v4879_v17 = vpop.eup %4878 }
 0xa15   : > { %v1929_v59 = vsel %vm973_vm4, %v4879_v17, 0.0 }
 0xa16   : > { %1930 = vadd.xlane.f32.xlu1 %v1929_v59 }
 0xa18   : > { %v4881_v19 = vpop.eup %4880 }
 0xa19   : > { %v1932_v20 = vsel %vm980_vm5, %v4881_v19, 0.0 }
 0xa1a   : > { %1933 = vadd.xlane.f32.xlu0 %v1932_v20 }
 0xa27   : > { %2126 = vrot.lane.b32.xlu1 %v5100_v37, %s4950_s30 }
 0xa2b   : > { %2128 = vrot.lane.b32.xlu1 %v5107_v39, %s4950_s30 }
 0xa2e   : > { %v1806_v22 = vpop.f32.mrf.mxu1 }
 0xa2f   : > { %v5359_v26 = vadd.f32 %v1806_v22, %v1497_v18 }
 0xa30   : > { %661 = vperm.xlu0 %4797, %v627_v21   ;;  %v4610_v27 = vpop.f32.mrf.mxu1  ;;  %v628_v21 = vld [vmem:[%s6141_s5 + $0x28] sm:$0xff] }
 0xa34   : > { %2130 = vrot.lane.b32.xlu0 %v5113_v40, %s4950_s30  ;;  %s4194_s30 = sshll.u32 %s6151_s26, 4 }
 0xa35   : > { %s6015_s26 = scalar_lea.vmem %s6149_s13, %s4194_s30 }
 0xa9b   : > { %v1928_v33 = vpop.xlane.xlu0 %1927 }
 0xa9c   : > { %4882 = vrcp.f32 %v1928_v33 }
 0xa9f   : > { %v1931_v35 = vpop.xlane.xlu1 %1930 }
 0xaa0   : > { %4884 = vrcp.f32 %v1931_v35  ;;  %v635_v35 = vld [vmem:[%s6141_s5 + $0x60] sm:$0xff] }
 0xaa3   : > { %v1934_v38 = vpop.xlane.xlu0 %1933 }
 0xaa4   : > { %4886 = vrcp.f32 %v1934_v38 }
 0xaa9   : > { %v4883_v41 = vpop.eup %4882 }
 0xaaa   : > { %v1938_v43 = vmul.f32 %v4883_v41, %v4877_v36 }
 0xaab   : > { %v662_v42 = vpop.permute.xlu0 %661 }
 0xaac   : > { %v834_v13 = vadd.f32 %v5150_v62, %v662_v42  ;;  %4625 = vmatmul.mubr.msk.f32.vlgmr.msra.gmra.mxu1 %vm973_vm4, %v1938_v43  ;;  %v2127_v62 = vpop.permute.xlu1 %2126 }
 0xaad   : > { %v4885_v44 = vpop.eup %4884  ;;  %4627 = vmatprep.mubr.msk.f32.mxu1 %vm4946_vm2, %v4945_v28 }
 0xaae   : > { %4645 = vmatpush3.msra.mxu1 %v834_v13  ;;  %v1939_v45 = vmul.f32 %v4885_v44, %v4879_v17 }
 0xaaf   : > { %4666 = vmatprep.subr.mxu1 %v4945_v28  ;;  %v2131_v49 = vpop.permute.xlu0 %2130 }
 0xab0   : > { %4628 = vmatmul.mubr.msk.f32.gmra.mxu1 %vm973_vm4, %v1939_v45  ;;  %v2129_v48 = vpop.permute.xlu1 %2128 }
 0xab1   : > { %v4887_v46 = vpop.eup %4886  ;;  %4630 = vmatprep.mubr.msk.f32.mxu1 %vm4946_vm2, %v4945_v28 }
 0xab2   : > { %v1940_v47 = vmul.f32 %v4887_v46, %v4881_v19 }
 0xab4   : > { %4631 = vmatmul.mubr.msk.f32.gmra.mxu1 %vm973_vm4, %v1940_v47 }
 0xab5   : > { %4646 = vmatprep.mubr.msk.f32.mxu1 %vm4946_vm2, %v4945_v28 }
 0xab8   : > { %4647 = vmatmul.mubr.msk.f32.vlgmr.msra.gmra.mxu1 %vm880_vm3, %v2127_v62 }
 0xab9   : > { %4649 = vmatprep.mubr.msk.f32.mxu1 %vm4946_vm2, %v4945_v28 }
 0xabc   : > { %4650 = vmatmul.mubr.msk.f32.gmra.mxu1 %vm880_vm3, %v2129_v48 }
 0xabd   : > { %4652 = vmatprep.mubr.msk.f32.mxu1 %vm4946_vm2, %v4945_v28 }
 0xac0   : > { %4653 = vmatmul.mubr.msk.f32.gmra.mxu1 %vm880_vm3, %v2131_v49 }
 0xac1   : > { %4668 = vmatprep.mubr.msk.f32.mxu1 %vm4946_vm2, %v4945_v28 }
 0xb6c   : > { %v2019_v51 = vpop.f32.mrf.mxu1 }
 0xb6d   : > { %4636 = vmatmul.mubr.msk.f32.vlgmr.msra.gmra.mxu0 %vm880_vm3, %v2019_v51 }
 0xb6e   : > { %v4626_v52 = vpop.f32.mrf.mxu1  ;;  %4638 = vmatprep.mubr.msk.f32.mxu0 %vm4946_vm2, %v4945_v28 }
 0xb70   : > { %v2024_v53 = vpop.f32.mrf.mxu1 }
 0xb71   : > { %4639 = vmatmul.mubr.msk.f32.gmra.mxu0 %vm880_vm3, %v2024_v53 }
 0xb72   : > { %v4629_v54 = vpop.f32.mrf.mxu1  ;;  %4641 = vmatprep.mubr.msk.f32.mxu0 %vm4946_vm2, %v4945_v28 }
 0xb74   : > { %v2029_v55 = vpop.f32.mrf.mxu1 }
 0xb75   : > { %4642 = vmatmul.mubr.msk.f32.gmra.mxu0 %vm880_vm3, %v2029_v55 }
 0xb76   : > { %v4632_v56 = vpop.f32.mrf.mxu1  ;;  %4657 = vmatprep.mubr.msk.f32.mxu0 %vm4946_vm2, %v4945_v28 }
 0xb78   : > { %v2204_v58 = vpop.f32.mrf.mxu1 }
 0xb79   : > { %v2218_v60 = vmul.f32 0.35355338, %v2204_v58 }
 0xb7a   : > { %v4648_v0 = vpop.f32.mrf.mxu1 }
 0xb7b   : > { %v2221_v1 = vsel %vm973_vm4, %v2218_v60, -inf }
 0xb7c   : > { %2222 = vmax.xlane.f32.xlu1 %v2221_v1  ;;  %v2209_v3 = vpop.f32.mrf.mxu1  ;;  %v2346_v1 = vld [vmem:[%s6143_s7 + $0x20] sm:$0xff] }
 0xb7d   : > { %v2219_v4 = vmul.f32 0.35355338, %v2209_v3  ;;  %4667 = vmatpush3.msra.mxu1 %v2346_v1 }
 0xb7e   : > { %v4651_v5 = vpop.f32.mrf.mxu1  ;;  %4688 = vmatprep.subr.mxu1 %v4945_v28 }
 0xb7f   : > { %v2224_v7 = vsel %vm973_vm4, %v2219_v4, -inf }
 0xb80   : > { %2225 = vmax.xlane.f32.xlu0 %v2224_v7  ;;  %v2214_v9 = vpop.f32.mrf.mxu1 }
 0xb81   : > { %v2220_v11 = vmul.f32 0.35355338, %v2214_v9 }
 0xb82   : > { %v4654_v14 = vpop.f32.mrf.mxu1 }
 0xb83   : > { %v2227_v34 = vsel %vm980_vm5, %v2220_v11, -inf }
 0xb84   : > { %2228 = vmax.xlane.f32.xlu0 %v2227_v34 }
 0xc05   : > { %v2223_v8 = vpop.xlane.xlu1 %2222 }
 0xc06   : > { %v2230_v6 = vsub.f32 %v2218_v60, %v2223_v8 }
 0xc08   : > { %v2233_v16 = vmul.f32 1.442695, %v2230_v6 }
 0xc09   : > { %v2226_v36 = vpop.xlane.xlu0 %2225 }
 0xc0a   : > { %4888 = vpow2.f32 %v2233_v16  ;;  %v2231_v10 = vsub.f32 %v2219_v4, %v2226_v36 }
 0xc0c   : > { %v2235_v17 = vmul.f32 1.442695, %v2231_v10 }
 0xc0d   : > { %v2229_v41 = vpop.xlane.xlu0 %2228 }
 0xc0e   : > { %4890 = vpow2.f32 %v2235_v17  ;;  %v2232_v13 = vsub.f32 %v2220_v11, %v2229_v41 }
 0xc17   : > { %v4889_v59 = vpop.eup %4888 }
 0xc18   : > { %v2239_v19 = vsel %vm973_vm4, %v4889_v59, 0.0 }
 0xc19   : > { %2240 = vadd.xlane.f32.xlu1 %v2239_v19 }
 0xc1b   : > { %v4891_v20 = vpop.eup %4890 }
 0xc1c   : > { %v2242_v18 = vsel %vm973_vm4, %v4891_v20, 0.0 }
 0xc1d   : > { %2243 = vadd.xlane.f32.xlu0 %v2242_v18 }
 0xc2a   : > { %666 = vperm.xlu1 %4798, %v628_v21   ;;  %v636_v21 = vld [vmem:[%s6141_s5 + $0x68] sm:$0xff] }
 0xc2d   : > { %v2109_v22 = vpop.f32.mrf.mxu0 }
 0xc2e   : > { %v5404_v27 = vadd.f32 %v2109_v22, %v5340_v57  ;;  %v2237_v57 = vmul.f32 1.442695, %v2232_v13 }
 0xc2f   : > { %v4637_v33 = vpop.f32.mrf.mxu0 }
 0xc30   : > { %4892 = vpow2.f32 %v2237_v57 }
 0xc31   : > { %v2114_v38 = vpop.f32.mrf.mxu0 }
 0xc32   : > { %v5410_v43 = vadd.f32 %v2114_v38, %v5344_v32 }
 0xc33   : > { %v4640_v42 = vpop.f32.mrf.mxu0  ;;  %701 = vperm.xlu0 %4797, %v635_v35  }
 0xc35   : > { %v2119_v44 = vpop.f32.mrf.mxu0 }
 0xc36   : > { %v5413_v45 = vadd.f32 %v2119_v44, %v5359_v26 }
 0xc37   : > { %v4643_v46 = vpop.f32.mrf.mxu0  ;;  %2441 = vrot.lane.b32.xlu0 %v5107_v39, %s4951_s22 }
 0xc3d   : > { %v4893_v47 = vpop.eup %4892 }
 0xc3e   : > { %v2245_v62 = vsel %vm980_vm5, %v4893_v47, 0.0 }
 0xc4e   : > { %2246 = vadd.xlane.f32.xlu1 %v2245_v62 }
 0xc5f   : > { %2439 = vrot.lane.b32.xlu1 %v5100_v37, %s4951_s22 }
 0xc63   : > { %2443 = vrot.lane.b32.xlu1 %v5113_v40, %s4951_s22 }
 0xca2   : > { %v2241_v32 = vpop.xlane.xlu1 %2240 }
 0xca3   : > { %4894 = vrcp.f32 %v2241_v32 }
 0xca6   : > { %v2244_v48 = vpop.xlane.xlu0 %2243  ;;  %v667_v51 = vpop.permute.xlu1 %666 }
 0xca7   : > { %4896 = vrcp.f32 %v2244_v48  ;;  %v837_v53 = vadd.f32 %v5154_v2, %v667_v51 }
 0xcae   : > { %v702_v26 = vpop.permute.xlu0 %701 }
 0xcaf   : > { %v866_v49 = vadd.f32 %v5219_v29, %v702_v26 }
 0xcb0   : > { %v4895_v50 = vpop.eup %4894 }
 0xcb1   : > { %v2251_v52 = vmul.f32 %v4895_v50, %v4889_v59  ;;  %4656 = vmatpush3.xpose.msk.msra.mxu0 %vm973_vm4, %v866_v49 }
 0xcb2   : > { %4677 = vmatprep.subr.mxu0 %v4945_v28  ;;  %v2442_v60 = vpop.permute.xlu0 %2441 }
 0xcb4   : > { %v4897_v54 = vpop.eup %4896  ;;  %4658 = vmatmul.mubr.msk.f32.vlgmr.msra.gmra.mxu0 %vm973_vm4, %v2251_v52 }
 0xcb5   : > { %4678 = vmatpush3.msra.mxu0 %v837_v53  ;;  %4660 = vmatprep.mubr.msk.f32.mxu0 %vm4946_vm2, %v4945_v28  ;;  %v2252_v55 = vmul.f32 %v4897_v54, %v4891_v20 }
 0xcb6   : > { %4699 = vmatprep.subr.mxu0 %v4945_v28 }
 0xcb8   : > { %4661 = vmatmul.mubr.msk.f32.gmra.mxu0 %vm973_vm4, %v2252_v55 }
 0xcb9   : > { %4663 = vmatprep.mubr.msk.f32.mxu0 %vm4946_vm2, %v4945_v28 }
 0xcd7   : > { %v2247_v29 = vpop.xlane.xlu1 %2246 }
 0xcd8   : > { %4898 = vrcp.f32 %v2247_v29 }
 0xcdb   : > { %v2440_v2 = vpop.permute.xlu1 %2439 }
 0xcdf   : > { %v2444_v0 = vpop.permute.xlu1 %2443 }
 0xce5   : > { %v4899_v56 = vpop.eup %4898 }
 0xce6   : > { %v2253_v58 = vmul.f32 %v4899_v56, %v4893_v47 }
 0xce8   : > { %4664 = vmatmul.mubr.msk.f32.gmra.mxu0 %vm973_vm4, %v2253_v58 }
 0xce9   : > { %4679 = vmatprep.mubr.msk.f32.mxu0 %vm4946_vm2, %v4945_v28 }
 0xcec   : > { %4680 = vmatmul.mubr.msk.f32.vlgmr.msra.gmra.mxu0 %vm880_vm3, %v2440_v2 }
 0xced   : > { %4682 = vmatprep.mubr.msk.f32.mxu0 %vm4946_vm2, %v4945_v28 }
 0xcf0   : > { %4683 = vmatmul.mubr.msk.f32.gmra.mxu0 %vm880_vm3, %v2442_v60 }
 0xcf1   : > { %4685 = vmatprep.mubr.msk.f32.mxu0 %vm4946_vm2, %v4945_v28 }
 0xcf4   : > { %4686 = vmatmul.mubr.msk.f32.gmra.mxu0 %vm880_vm3, %v2444_v0 }
 0xcf5   : > { %4701 = vmatprep.mubr.msk.f32.mxu0 %vm4946_vm2, %v4945_v28 }
 0xd74   : > { %v2332_v3 = vpop.f32.mrf.mxu0 }
 0xd75   : > { %4669 = vmatmul.mubr.msk.f32.vlgmr.msra.gmra.mxu1 %vm880_vm3, %v2332_v3 }
 0xd76   : > { %v4659_v4 = vpop.f32.mrf.mxu0  ;;  %4671 = vmatprep.mubr.msk.f32.mxu1 %vm4946_vm2, %v4945_v28 }
 0xd78   : > { %v2337_v5 = vpop.f32.mrf.mxu0 }
 0xd79   : > { %4672 = vmatmul.mubr.msk.f32.gmra.mxu1 %vm880_vm3, %v2337_v5 }
 0xd7a   : > { %v4662_v7 = vpop.f32.mrf.mxu0  ;;  %4674 = vmatprep.mubr.msk.f32.mxu1 %vm4946_vm2, %v4945_v28 }
 0xda8   : > { %v2342_v9 = vpop.f32.mrf.mxu0 }
 0xda9   : > { %4675 = vmatmul.mubr.msk.f32.gmra.mxu1 %vm880_vm3, %v2342_v9 }
 0xdaa   : > { %v4665_v11 = vpop.f32.mrf.mxu0  ;;  %4690 = vmatprep.mubr.msk.f32.mxu1 %vm4946_vm2, %v4945_v28 }
 0xdac   : > { %v2517_v14 = vpop.f32.mrf.mxu0 }
 0xdad   : > { %v2531_v34 = vmul.f32 0.35355338, %v2517_v14 }
 0xdae   : > { %v4681_v8 = vpop.f32.mrf.mxu0 }
 0xdaf   : > { %v2534_v6 = vsel %vm973_vm4, %v2531_v34, -inf }
 0xdb0   : > { %2535 = vmax.xlane.f32.xlu0 %v2534_v6  ;;  %v2522_v16 = vpop.f32.mrf.mxu0 }
 0xdb1   : > { %v2532_v36 = vmul.f32 0.35355338, %v2522_v16 }
 0xdb2   : > { %v4684_v10 = vpop.f32.mrf.mxu0 }
 0xdb3   : > { %v2537_v17 = vsel %vm973_vm4, %v2532_v36, -inf }
 0xdb4   : > { %2538 = vmax.xlane.f32.xlu1 %v2537_v17  ;;  %v2527_v59 = vpop.f32.mrf.mxu0 }
 0xdb5   : > { %v2533_v19 = vmul.f32 0.35355338, %v2527_v59 }
 0xdb6   : > { %v4687_v20 = vpop.f32.mrf.mxu0 }
 0xdb7   : > { %v2540_v18 = vsel %vm980_vm5, %v2533_v19, -inf }
 0xdb8   : > { %2541 = vmax.xlane.f32.xlu0 %v2540_v18 }
 0xdc5   : > { %706 = vperm.xlu1 %4798, %v636_v21  }
 0xe35   : > { %v2422_v22 = vpop.f32.mrf.mxu1 }
 0xe36   : > { %v5462_v33 = vadd.f32 %v2422_v22, %v5404_v27 }
 0xe37   : > { %v4670_v35 = vpop.f32.mrf.mxu1 }
 0xe39   : > { %v2536_v38 = vpop.xlane.xlu0 %2535  ;;  %v2427_v41 = vpop.f32.mrf.mxu1 }
 0xe3a   : > { %v2543_v42 = vsub.f32 %v2531_v34, %v2536_v38  ;;  %v5465_v13 = vadd.f32 %v2427_v41, %v5410_v43  ;;  %v2659_v34 = vld [vmem:[%s6143_s7 + $0x28] sm:$0xff] }
 0xe3b   : > { %v4673_v44 = vpop.f32.mrf.mxu1  ;;  %4700 = vmatpush3.msra.mxu0 %v2659_v34 }
 0xe3c   : > { %v2546_v46 = vmul.f32 1.442695, %v2543_v42  ;;  %4721 = vmatprep.subr.mxu0 %v4945_v28 }
 0xe3d   : > { %v2539_v57 = vpop.xlane.xlu1 %2538 }
 0xe3e   : > { %4900 = vpow2.f32 %v2546_v46  ;;  %v2544_v47 = vsub.f32 %v2532_v36, %v2539_v57 }
 0xe40   : > { %v2548_v62 = vmul.f32 1.442695, %v2544_v47 }
 0xe41   : > { %v707_v32 = vpop.permute.xlu1 %706  ;;  %v2542_v48 = vpop.xlane.xlu0 %2541 }
 0xe42   : > { %4902 = vpow2.f32 %v2548_v62  ;;  %v869_v26 = vadd.f32 %v5223_v31, %v707_v32  ;;  %v2545_v27 = vsub.f32 %v2533_v19, %v2542_v48  ;;  %v629_v31 = vld [vmem:[%s6141_s5 + $0x30] sm:$0xff] }
 0xe44   : > { %v2550_v49 = vmul.f32 1.442695, %v2545_v27  ;;  %4689 = vmatpush3.xpose.msk.msra.mxu1 %vm973_vm4, %v869_v26 }
 0xe45   : > { %4710 = vmatprep.subr.mxu1 %v4945_v28 }
 0xe46   : > { %4904 = vpow2.f32 %v2550_v49 }
 0xe4b   : > { %v4901_v43 = vpop.eup %4900 }
 0xe4c   : > { %v2552_v50 = vsel %vm973_vm4, %v4901_v43, 0.0 }
 0xe4d   : > { %2553 = vadd.xlane.f32.xlu0 %v2552_v50 }
 0xe4f   : > { %v4903_v51 = vpop.eup %4902 }
 0xe50   : > { %v2555_v52 = vsel %vm973_vm4, %v4903_v51, 0.0 }
 0xe51   : > { %2556 = vadd.xlane.f32.xlu1 %v2555_v52 }
 0xe53   : > { %v4905_v53 = vpop.eup %4904 }
 0xe54   : > { %v2558_v54 = vsel %vm980_vm5, %v4905_v53, 0.0 }
 0xe55   : > { %2559 = vadd.xlane.f32.xlu0 %v2558_v54 }
 0xe62   : > { %2752 = vrot.lane.b32.xlu1 %v5100_v37, %s4952_s29 }
 0xe66   : > { %2754 = vrot.lane.b32.xlu1 %v5107_v39, %s4952_s29 }
 0xe69   : > { %v2432_v55 = vpop.f32.mrf.mxu1 }
 0xe6a   : > { %v5479_v29 = vadd.f32 %v2432_v55, %v5413_v45 }
 0xe6b   : > { %671 = vperm.xlu0 %4797, %v629_v31   ;;  %v4676_v56 = vpop.f32.mrf.mxu1  ;;  %v637_v31 = vld [vmem:[%s6141_s5 + $0x70] sm:$0xff] }
 0xe6f   : > { %2756 = vrot.lane.b32.xlu0 %v5113_v40, %s4952_s29 }
 0xed6   : > { %v2554_v58 = vpop.xlane.xlu0 %2553 }
 0xed7   : > { %4906 = vrcp.f32 %v2554_v58 }
 0xeda   : > { %v2557_v2 = vpop.xlane.xlu1 %2556 }
 0xedb   : > { %4908 = vrcp.f32 %v2557_v2 }
 0xede   : > { %v2560_v60 = vpop.xlane.xlu0 %2559 }
 0xedf   : > { %4910 = vrcp.f32 %v2560_v60 }
 0xee4   : > { %v4907_v0 = vpop.eup %4906 }
 0xee5   : > { %v2564_v1 = vmul.f32 %v4907_v0, %v4901_v43 }
 0xee6   : > { %v672_v3 = vpop.permute.xlu0 %671 }
 0xee7   : > { %v842_v4 = vadd.f32 %v5148_v61, %v672_v3  ;;  %4691 = vmatmul.mubr.msk.f32.vlgmr.msra.gmra.mxu1 %vm973_vm4, %v2564_v1  ;;  %v2753_v61 = vpop.permute.xlu1 %2752 }
 0xee8   : > { %v4909_v5 = vpop.eup %4908  ;;  %4693 = vmatprep.mubr.msk.f32.mxu1 %vm4946_vm2, %v4945_v28 }
 0xee9   : > { %4711 = vmatpush3.msra.mxu1 %v842_v4  ;;  %v2565_v45 = vmul.f32 %v4909_v5, %v4903_v51  ;;  %v630_v51 = vld [vmem:[%s6141_s5 + $0x38] sm:$0xff] }
 0xeea   : > { %4732 = vmatprep.subr.mxu1 %v4945_v28  ;;  %v2757_v14 = vpop.permute.xlu0 %2756 }
 0xeeb   : > { %4694 = vmatmul.mubr.msk.f32.gmra.mxu1 %vm973_vm4, %v2565_v45  ;;  %v2755_v11 = vpop.permute.xlu1 %2754 }
 0xeec   : > { %v4911_v7 = vpop.eup %4910  ;;  %4696 = vmatprep.mubr.msk.f32.mxu1 %vm4946_vm2, %v4945_v28 }
 0xeed   : > { %v2566_v9 = vmul.f32 %v4911_v7, %v4905_v53 }
 0xeef   : > { %4697 = vmatmul.mubr.msk.f32.gmra.mxu1 %vm973_vm4, %v2566_v9 }
 0xef0   : > { %4712 = vmatprep.mubr.msk.f32.mxu1 %vm4946_vm2, %v4945_v28 }
 0xef3   : > { %4713 = vmatmul.mubr.msk.f32.vlgmr.msra.gmra.mxu1 %vm880_vm3, %v2753_v61 }
 0xef4   : > { %4715 = vmatprep.mubr.msk.f32.mxu1 %vm4946_vm2, %v4945_v28 }
 0xef7   : > { %4716 = vmatmul.mubr.msk.f32.gmra.mxu1 %vm880_vm3, %v2755_v11 }
 0xef8   : > { %4718 = vmatprep.mubr.msk.f32.mxu1 %vm4946_vm2, %v4945_v28 }
 0xefb   : > { %4719 = vmatmul.mubr.msk.f32.gmra.mxu1 %vm880_vm3, %v2757_v14 }
 0xefc   : > { %4734 = vmatprep.mubr.msk.f32.mxu1 %vm4946_vm2, %v4945_v28 }
 0xfa7   : > { %v2645_v8 = vpop.f32.mrf.mxu1 }
 0xfa8   : > { %4702 = vmatmul.mubr.msk.f32.vlgmr.msra.gmra.mxu0 %vm880_vm3, %v2645_v8 }
 0xfa9   : > { %v4692_v6 = vpop.f32.mrf.mxu1  ;;  %4704 = vmatprep.mubr.msk.f32.mxu0 %vm4946_vm2, %v4945_v28 }
 0xfab   : > { %v2650_v16 = vpop.f32.mrf.mxu1 }
 0xfac   : > { %4705 = vmatmul.mubr.msk.f32.gmra.mxu0 %vm880_vm3, %v2650_v16  ;;  %v2972_v16 = vld [vmem:[%s6143_s7 + $0x30] sm:$0xff] }
 0xfad   : > { %v4695_v36 = vpop.f32.mrf.mxu1  ;;  %4707 = vmatprep.mubr.msk.f32.mxu0 %vm4946_vm2, %v4945_v28  ;;  %4733 = vmatpush3.msra.mxu1 %v2972_v16 }
 0xfae   : > { %4754 = vmatprep.subr.mxu1 %v4945_v28 }
 0xfaf   : > { %v2655_v10 = vpop.f32.mrf.mxu1 }
 0xfb0   : > { %4708 = vmatmul.mubr.msk.f32.gmra.mxu0 %vm880_vm3, %v2655_v10 }
 0xfb1   : > { %v4698_v17 = vpop.f32.mrf.mxu1  ;;  %4723 = vmatprep.mubr.msk.f32.mxu0 %vm4946_vm2, %v4945_v28 }
 0xfb3   : > { %v2830_v59 = vpop.f32.mrf.mxu1 }
 0xfb4   : > { %v2844_v19 = vmul.f32 0.35355338, %v2830_v59 }
 0xfb5   : > { %v4714_v20 = vpop.f32.mrf.mxu1 }
 0xfb6   : > { %v2847_v18 = vsel %vm973_vm4, %v2844_v19, -inf }
 0xfb7   : > { %2848 = vmax.xlane.f32.xlu1 %v2847_v18  ;;  %v2835_v21 = vpop.f32.mrf.mxu1 }
 0xfb8   : > { %v2845_v22 = vmul.f32 0.35355338, %v2835_v21 }
 0xfb9   : > { %v4717_v35 = vpop.f32.mrf.mxu1 }
 0xfba   : > { %v2850_v38 = vsel %vm973_vm4, %v2845_v22, -inf }
 0xfbb   : > { %2851 = vmax.xlane.f32.xlu0 %v2850_v38  ;;  %v2840_v41 = vpop.f32.mrf.mxu1 }
 0xfbc   : > { %v2846_v42 = vmul.f32 0.35355338, %v2840_v41 }
 0xfbd   : > { %v4720_v44 = vpop.f32.mrf.mxu1 }
 0xfbe   : > { %v2853_v46 = vsel %vm980_vm5, %v2846_v42, -inf }
 0xfbf   : > { %2854 = vmax.xlane.f32.xlu0 %v2853_v46 }
0x1040   : > { %v2849_v57 = vpop.xlane.xlu1 %2848 }
0x1041   : > { %v2856_v47 = vsub.f32 %v2844_v19, %v2849_v57 }
0x1043   : > { %v2859_v62 = vmul.f32 1.442695, %v2856_v47 }
0x1044   : > { %v2852_v32 = vpop.xlane.xlu0 %2851 }
0x1045   : > { %4912 = vpow2.f32 %v2859_v62  ;;  %v2857_v48 = vsub.f32 %v2845_v22, %v2852_v32 }
0x1047   : > { %v2861_v26 = vmul.f32 1.442695, %v2857_v48 }
0x1048   : > { %v2855_v56 = vpop.xlane.xlu0 %2854 }
0x1049   : > { %4914 = vpow2.f32 %v2861_v26  ;;  %v2858_v60 = vsub.f32 %v2846_v42, %v2855_v56 }
0x1052   : > { %v4913_v27 = vpop.eup %4912 }
0x1053   : > { %v2865_v49 = vsel %vm973_vm4, %v4913_v27, 0.0 }
0x1054   : > { %2866 = vadd.xlane.f32.xlu1 %v2865_v49 }
0x1056   : > { %v4915_v43 = vpop.eup %4914 }
0x1057   : > { %v2868_v50 = vsel %vm973_vm4, %v4915_v43, 0.0 }
0x1058   : > { %2869 = vadd.xlane.f32.xlu0 %v2868_v50 }
0x1065   : > { %676 = vperm.xlu1 %4798, %v630_v51  }
0x1068   : > { %v2735_v52 = vpop.f32.mrf.mxu0 }
0x1069   : > { %v5524_v53 = vadd.f32 %v2735_v52, %v5462_v33  ;;  %v2863_v33 = vmul.f32 1.442695, %v2858_v60 }
0x106a   : > { %v4703_v54 = vpop.f32.mrf.mxu0 }
0x106b   : > { %4916 = vpow2.f32 %v2863_v33 }
0x106c   : > { %v2740_v55 = vpop.f32.mrf.mxu0 }
0x106d   : > { %v5530_v58 = vadd.f32 %v2740_v55, %v5465_v13 }
0x106e   : > { %v4706_v2 = vpop.f32.mrf.mxu0  ;;  %711 = vperm.xlu0 %4797, %v637_v31  }
0x1070   : > { %v2745_v0 = vpop.f32.mrf.mxu0 }
0x1071   : > { %v5533_v1 = vadd.f32 %v2745_v0, %v5479_v29 }
0x1072   : > { %v4709_v3 = vpop.f32.mrf.mxu0  ;;  %3067 = vrot.lane.b32.xlu0 %v5107_v39, %s4953_s21 }
0x1078   : > { %v4917_v4 = vpop.eup %4916 }
0x1079   : > { %v2871_v5 = vsel %vm980_vm5, %v4917_v4, 0.0 }
0x1089   : > { %2872 = vadd.xlane.f32.xlu1 %v2871_v5  ;;  %v638_v5 = vld [vmem:[%s6141_s5 + $0x78] sm:$0xff] }
0x109a   : > { %3065 = vrot.lane.b32.xlu1 %v5100_v37, %s4953_s21 }
0x109e   : > { %3069 = vrot.lane.b32.xlu1 %v5113_v40, %s4953_s21 }
0x10dd   : > { %v2867_v13 = vpop.xlane.xlu1 %2866 }
0x10de   : > { %4918 = vrcp.f32 %v2867_v13 }
0x10e1   : > { %v2870_v45 = vpop.xlane.xlu0 %2869  ;;  %v677_v61 = vpop.permute.xlu1 %676 }
0x10e2   : > { %4920 = vrcp.f32 %v2870_v45  ;;  %v845_v11 = vadd.f32 %v5152_v63, %v677_v61 }
0x10e9   : > { %v712_v29 = vpop.permute.xlu0 %711 }
0x10ea   : > { %v874_v7 = vadd.f32 %v5216_v25, %v712_v29 }
0x10eb   : > { %v4919_v9 = vpop.eup %4918 }
0x10ec   : > { %v2877_v39 = vmul.f32 %v4919_v9, %v4913_v27  ;;  %4722 = vmatpush3.xpose.msk.msra.mxu0 %vm973_vm4, %v874_v7  ;;  %v3285_v7 = vld [vmem:[%s6143_s7 + $0x38] sm:$0xff] }
0x10ed   : > { %4743 = vmatprep.subr.mxu0 %v4945_v28  ;;  %v3068_v8 = vpop.permute.xlu0 %3067 }
0x10ef   : > { %v4921_v14 = vpop.eup %4920  ;;  %4724 = vmatmul.mubr.msk.f32.vlgmr.msra.gmra.mxu0 %vm973_vm4, %v2877_v39 }
0x10f0   : > { %4744 = vmatpush3.msra.mxu0 %v845_v11  ;;  %4726 = vmatprep.mubr.msk.f32.mxu0 %vm4946_vm2, %v4945_v28  ;;  %v2878_v37 = vmul.f32 %v4921_v14, %v4915_v43 }
0x10f1   : > { %4765 = vmatprep.subr.mxu0 %v4945_v28 }
0x10f3   : > { %4727 = vmatmul.mubr.msk.f32.gmra.mxu0 %vm973_vm4, %v2878_v37 }
0x10f4   : > { %4729 = vmatprep.mubr.msk.f32.mxu0 %vm4946_vm2, %v4945_v28 }
0x1112   : > { %v2873_v40 = vpop.xlane.xlu1 %2872 }
0x1113   : > { %4922 = vrcp.f32 %v2873_v40 }
0x1116   : > { %v3066_v63 = vpop.permute.xlu1 %3065 }
0x111a   : > { %v3070_v6 = vpop.permute.xlu1 %3069 }
0x1120   : > { %v4923_v25 = vpop.eup %4922 }
0x1121   : > { %v2879_v34 = vmul.f32 %v4923_v25, %v4917_v4 }
0x1123   : > { %4730 = vmatmul.mubr.msk.f32.gmra.mxu0 %vm973_vm4, %v2879_v34 }
0x1124   : > { %4745 = vmatprep.mubr.msk.f32.mxu0 %vm4946_vm2, %v4945_v28 }
0x1127   : > { %4746 = vmatmul.mubr.msk.f32.vlgmr.msra.gmra.mxu0 %vm880_vm3, %v3066_v63 }
0x1128   : > { %4748 = vmatprep.mubr.msk.f32.mxu0 %vm4946_vm2, %v4945_v28  ;;  %4766 = vmatpush3.msra.mxu0 %v3285_v7  ;;  %v3398_v7 = vld [vmem:[%s6145_s9] sm:$0x3] }
0x112b   : > { %4749 = vmatmul.mubr.msk.f32.gmra.mxu0 %vm880_vm3, %v3068_v8  ;;  %v4814_v8 = vld [vmem:[%s6144_s8 + $0x34] ss:$8 sps:$4 sm:$0xff]  }
0x112c   : > { %4751 = vmatprep.mubr.msk.f32.mxu0 %vm4946_vm2, %v4945_v28 }
0x112f   : > { %4752 = vmatmul.mubr.msk.f32.gmra.mxu0 %vm880_vm3, %v3070_v6 }
0x1130   : > { %4767 = vmatprep.mubr.msk.f32.mxu0 %vm4946_vm2, %v4945_v28 }
0x11af   : > { %v2958_v36 = vpop.f32.mrf.mxu0 }
0x11b0   : > { %4735 = vmatmul.mubr.msk.f32.vlgmr.msra.gmra.mxu1 %vm880_vm3, %v2958_v36 }
0x11b1   : > { %v4725_v10 = vpop.f32.mrf.mxu0  ;;  %4737 = vmatprep.mubr.msk.f32.mxu1 %vm4946_vm2, %v4945_v28 }
0x11b3   : > { %v2963_v17 = vpop.f32.mrf.mxu0 }
0x11b4   : > { %4738 = vmatmul.mubr.msk.f32.gmra.mxu1 %vm880_vm3, %v2963_v17 }
0x11b5   : > { %v4728_v59 = vpop.f32.mrf.mxu0  ;;  %4740 = vmatprep.mubr.msk.f32.mxu1 %vm4946_vm2, %v4945_v28 }
0x11e3   : > { %v2968_v19 = vpop.f32.mrf.mxu0 }
0x11e4   : > { %4741 = vmatmul.mubr.msk.f32.gmra.mxu1 %vm880_vm3, %v2968_v19  ;;  %v4817_v19 = vld [vmem:[%s6144_s8 + $0x24] ss:$8 sps:$4 sm:$0xff]  }
0x11e5   : > { %v4731_v20 = vpop.f32.mrf.mxu0  ;;  %4756 = vmatprep.mubr.msk.f32.mxu1 %vm4946_vm2, %v4945_v28 }
0x11e6   : > { %v4815_v20 = vld [vmem:[%s6144_s8 + $0x20] ss:$8 sps:$4 sm:$0xff]  }
0x11e7   : > { %v3143_v18 = vpop.f32.mrf.mxu0 }
0x11e8   : > { %v3157_v21 = vmul.f32 0.35355338, %v3143_v18  ;;  %v4820_v18 = vld [vmem:[%s6144_s8 + $0x14] ss:$8 sps:$4 sm:$0xff]  }
0x11e9   : > { %v4747_v22 = vpop.f32.mrf.mxu0 }
0x11ea   : > { %v3160_v35 = vsel %vm973_vm4, %v3157_v21, -inf  ;;  %v4821_v22 = vld [vmem:[%s6144_s8] ss:$8 sps:$4 sm:$0xff]  }
0x11eb   : > { %3161 = vmax.xlane.f32.xlu0 %v3160_v35  ;;  %v3148_v38 = vpop.f32.mrf.mxu0  ;;  %v4824_v35 = vld [vmem:[%s6146_s10 + $0x78] sm:$0xff]  }
0x11ec   : > { %v3158_v41 = vmul.f32 0.35355338, %v3148_v38  ;;  %v4825_v38 = vld [vmem:[%s6146_s10 + $0x38] sm:$0xff]   ;;  %4446 = vmatprep.subr.bf16.mxu0 %v4824_v35 }
0x11ed   : > { %v4750_v42 = vpop.f32.mrf.mxu0 }
0x11ee   : > { %v3163_v44 = vsel %vm973_vm4, %v3158_v41, -inf  ;;  %v4827_v42 = vld [vmem:[%s6146_s10 + $0x30] sm:$0xff]  }
0x11ef   : > { %3164 = vmax.xlane.f32.xlu1 %v3163_v44  ;;  %v3153_v46 = vpop.f32.mrf.mxu0  ;;  %v4828_v44 = vld [vmem:[%s6146_s10 + $0x68] sm:$0xff]  }
0x11f0   : > { %v3159_v57 = vmul.f32 0.35355338, %v3153_v46  ;;  %v4829_v46 = vld [vmem:[%s6146_s10 + $0x28] sm:$0xff]  }
0x11f1   : > { %v4753_v47 = vpop.f32.mrf.mxu0 }
0x11f2   : > { %v3166_v62 = vsel %vm980_vm5, %v3159_v57, -inf  ;;  %v4831_v47 = vld [vmem:[%s6146_s10 + $0x20] sm:$0xff]  }
0x11f3   : > { %3167 = vmax.xlane.f32.xlu0 %v3166_v62  ;;  %v4832_v62 = vld [vmem:[%s6146_s10 + $0x58] sm:$0xff]  }
0x1270   : > { %v3048_v32 = vpop.f32.mrf.mxu1 }
0x1271   : > { %v5579_v48 = vadd.f32 %v3048_v32, %v5524_v53  ;;  %v4833_v32 = vld [vmem:[%s6146_s10 + $0x18] sm:$0xff]  }
0x1272   : > { %v4736_v26 = vpop.f32.mrf.mxu1 }
0x1274   : > { %v3162_v27 = vpop.xlane.xlu0 %3161  ;;  %v3053_v49 = vpop.f32.mrf.mxu1 }
0x1275   : > { %v3169_v43 = vsub.f32 %v3157_v21, %v3162_v27  ;;  %v5582_v50 = vadd.f32 %v3053_v49, %v5530_v58  ;;  %v4823_v21 = vld [vmem:[%s6144_s8 + $0x4] ss:$8 sps:$4 sm:$0xff]   ;;  %v4301_v49 = vld [vmem:[%s6142_s6 + $0x1] ss:$0 sm:$0xff] }
0x1276   : > { %v4739_v51 = vpop.f32.mrf.mxu1 }
0x1277   : > { %v3172_v52 = vmul.f32 1.442695, %v3169_v43 }
0x1278   : > { %v3165_v54 = vpop.xlane.xlu1 %3164 }
0x1279   : > { %4924 = vpow2.f32 %v3172_v52  ;;  %v3170_v31 = vsub.f32 %v3158_v41, %v3165_v54  ;;  %v4826_v41 = vld [vmem:[%s6146_s10 + $0x70] sm:$0xff]  }
0x127b   : > { %v3174_v55 = vmul.f32 1.442695, %v3170_v31 }
0x127c   : > { %v3168_v56 = vpop.xlane.xlu0 %3167 }
0x127d   : > { %4926 = vpow2.f32 %v3174_v55  ;;  %v3171_v2 = vsub.f32 %v3159_v57, %v3168_v56  ;;  %v4830_v57 = vld [vmem:[%s6146_s10 + $0x60] sm:$0xff]  }
0x127f   : > { %v3176_v60 = vmul.f32 1.442695, %v3171_v2 }
0x1281   : > { %4928 = vpow2.f32 %v3176_v60 }
0x1286   : > { %v4925_v53 = vpop.eup %4924 }
0x1287   : > { %v3178_v0 = vsel %vm973_vm4, %v4925_v53, 0.0 }
0x1288   : > { %3179 = vadd.xlane.f32.xlu0 %v3178_v0 }
0x128a   : > { %v4927_v3 = vpop.eup %4926 }
0x128b   : > { %v3181_v33 = vsel %vm973_vm4, %v4927_v3, 0.0 }
0x128c   : > { %3182 = vadd.xlane.f32.xlu1 %v3181_v33  ;;  %v4835_v33 = vld [vmem:[%s6146_s10 + $0x10] sm:$0xff]  }
0x128e   : > { %v4929_v58 = vpop.eup %4928 }
0x128f   : > { %v3184_v4 = vsel %vm980_vm5, %v4929_v58, 0.0 }
0x1290   : > { %3185 = vadd.xlane.f32.xlu0 %v3184_v4  ;;  %v4839_v4 = vld [vmem:[%s6146_s10] sm:$0xff]  }
0x129d   : > { %716 = vperm.xlu1 %4798, %v638_v5   ;;  %v3400_v5 = vlaneseq }
0x12a4   : > { %v3058_v13 = vpop.f32.mrf.mxu1 }
0x12a5   : > { %v5591_v45 = vadd.f32 %v3058_v13, %v5533_v1  ;;  %v3401_v13 = vshrl.u32 %v3400_v5, 7 }
0x12a6   : > { %v4742_v29 = vpop.f32.mrf.mxu1 }
0x12a7   : > { %v3402_v29 = vsub.s32 0, %v3401_v13 }
0x1311   : > { %v3180_v9 = vpop.xlane.xlu0 %3179 }
0x1312   : > { %4930 = vrcp.f32 %v3180_v9 }
0x1315   : > { %v3183_v61 = vpop.xlane.xlu1 %3182 }
0x1316   : > { %4932 = vrcp.f32 %v3183_v61 }
0x1319   : > { %v717_v39 = vpop.permute.xlu1 %716  ;;  %v3186_v11 = vpop.xlane.xlu0 %3185 }
0x131a   : > { %v877_v14 = vadd.f32 %v5221_v30, %v717_v39  ;;  %4934 = vrcp.f32 %v3186_v11  ;;  %v4812_v30 = vld [vmem:[%s6144_s8 + $0x30] ss:$8 sps:$4 sm:$0xff]   ;;  %v3403_v39 = vrot.slane %v3398_v7, %v3402_v29 }
0x131c   : > { %4755 = vmatpush3.xpose.msk.msra.mxu1 %vm973_vm4, %v877_v14 }
0x131d   : > { %3464 = vmatprep.subr.bf16.mxu1 %v4814_v8 }
0x131f   : > { %v4931_v37 = vpop.eup %4930 }
0x1320   : > { %v3190_v1 = vmul.f32 %v4931_v37, %v4925_v53 }
0x1322   : > { %4757 = vmatmul.mubr.msk.f32.vlgmr.msra.gmra.mxu1 %vm973_vm4, %v3190_v1 }
0x1323   : > { %v4933_v40 = vpop.eup %4932  ;;  %4759 = vmatprep.mubr.msk.f32.mxu1 %vm4946_vm2, %v4945_v28  ;;  %3465 = vmatpush1.bf16.msra.mxu1 %v4812_v30 }
0x1324   : > { %v3191_v25 = vmul.f32 %v4933_v40, %v4927_v3  ;;  %3466 = vmatprep.subr.bf16.mxu1 %v4817_v19 }
0x1326   : > { %4760 = vmatmul.mubr.msk.f32.gmra.mxu1 %vm973_vm4, %v3191_v25 }
0x1327   : > { %v4935_v34 = vpop.eup %4934  ;;  %4762 = vmatprep.mubr.msk.f32.mxu1 %vm4946_vm2, %v4945_v28  ;;  %3467 = vmatpush1.bf16.msra.mxu1 %v4815_v20 }
0x1328   : > { %v3192_v63 = vmul.f32 %v4935_v34, %v4929_v58  ;;  %3468 = vmatprep.subr.bf16.mxu1 %v4820_v18  ;;  %v4838_v58 = vld [vmem:[%s6146_s10 + $0x40] sm:$0xff]  }
0x132a   : > { %4763 = vmatmul.mubr.msk.f32.gmra.mxu1 %vm973_vm4, %v3192_v63 }
0x132b   : > { %3488 = vmatprep.mubr.bf16.mxu1 %v4944_v12 }
0x13e2   : > { %v3271_v6 = vpop.f32.mrf.mxu1 }
0x13e3   : > { %4768 = vmatmul.mubr.msk.f32.vlgmr.msra.gmra.mxu0 %vm880_vm3, %v3271_v6 }
0x13e4   : > { %v4758_v16 = vpop.f32.mrf.mxu1  ;;  %4770 = vmatprep.mubr.msk.f32.mxu0 %vm4946_vm2, %v4945_v28  ;;  %4447 = vmatpush3.bf16.msra.mxu0 %v4825_v38 }
0x13e5   : > { %4448 = vmatprep.subr.bf16.mxu0 %v4826_v41  ;;  %v4312_v41 = vld [vmem:[%s6142_s6 + $0x2] ss:$0 sm:$0xff] }
0x13e6   : > { %v3276_v36 = vpop.f32.mrf.mxu1 }
0x13e7   : > { %4771 = vmatmul.mubr.msk.f32.gmra.mxu0 %vm880_vm3, %v3276_v36 }
0x13e8   : > { %v4761_v10 = vpop.f32.mrf.mxu1  ;;  %4773 = vmatprep.mubr.msk.f32.mxu0 %vm4946_vm2, %v4945_v28  ;;  %v4818_v28 = vld [vmem:[%s6144_s8 + $0x10] ss:$8 sps:$4 sm:$0xff]   ;;  %4449 = vmatpush3.bf16.msra.mxu0 %v4827_v42 }
0x13e9   : > { %3469 = vmatpush1.bf16.msra.mxu1 %v4818_v28  ;;  %4450 = vmatprep.subr.bf16.mxu0 %v4828_v44 }
0x13ea   : > { %v3281_v17 = vpop.f32.mrf.mxu1  ;;  %3470 = vmatprep.subr.bf16.mxu1 %v4823_v21 }
0x13eb   : > { %4774 = vmatmul.mubr.msk.f32.gmra.mxu0 %vm880_vm3, %v3281_v17 }
0x13ec   : > { %v4764_v59 = vpop.f32.mrf.mxu1  ;;  %4451 = vmatpush3.bf16.msra.mxu0 %v4829_v46 }
0x13ed   : > { %3471 = vmatpush1.bf16.msra.mxu1 %v4821_v22  ;;  %4452 = vmatprep.subr.bf16.mxu0 %v4830_v57 }
0x13f0   : > { %4453 = vmatpush3.bf16.msra.mxu0 %v4831_v47 }
0x13f1   : > { %4454 = vmatprep.subr.bf16.mxu0 %v4832_v62  ;;  %v3706_v62 = vld [vmem:[%s6147_s11 + $0x30] sm:$0xff] }
0x13f4   : > { %4455 = vmatpush3.bf16.msra.mxu0 %v4833_v32  ;;  %v3700_v32 = vld [vmem:[%s6147_s11] sm:$0xff] }
0x14a3   : > { %v3361_v26 = vpop.f32.mrf.mxu0 }
0x14a4   : > { %v3375_v27 = vadd.f32 %v3361_v26, %v5579_v48 }
0x14a5   : > { %v4769_v43 = vpop.f32.mrf.mxu0 }
0x14a6   : > { %v3382_v52 = vadd.f32 %v4301_v49, %v3375_v27  ;;  %v3703_v43 = vld [vmem:[%s6147_s11 + $0x18] sm:$0xff] }
0x14a7   : > { %v3366_v51 = vpop.f32.mrf.mxu0 }
0x14a8   : > { %v3376_v54 = vadd.f32 %v3366_v51, %v5582_v50  ;;  %v5673_v2 = vadd.f32 %v3382_v52, %v5077_v23 }
0x14a9   : > { %v4772_v31 = vpop.f32.mrf.mxu0 }
0x14aa   : > { %v3383_v55 = vadd.f32 %v4301_v49, %v3376_v54 }
0x14ab   : > { %v3371_v56 = vpop.f32.mrf.mxu0 }
0x14ac   : > { %v5676_v60 = vadd.f32 %v3383_v55, %v5079_v24  ;;  %v3377_v48 = vadd.f32 %v3371_v56, %v5591_v45  ;;  %v4834_v24 = vld [vmem:[%s6146_s10 + $0x50] sm:$0xff]   ;;  %v3406_v45 = vsub.s32 1, %v3401_v13 }
0x14ad   : > { %v4775_v53 = vpop.f32.mrf.mxu0  ;;  %4456 = vmatprep.subr.bf16.mxu0 %v4834_v24 }
0x14ae   : > { %v3388_v0 = vpack.c.bf16 %v5676_v60, %v5673_v2  ;;  %v3384_v3 = vadd.f32 %v4301_v49, %v3377_v48  ;;  %4457 = vmatpush3.bf16.msra.mxu0 %v4835_v33  ;;  %v3407_v61 = vrot.slane %v3398_v7, %v3406_v45  ;;  %v3721_v49 = vld [vmem:[%s6147_s11 + $0xa8] sm:$0xff]  ;;  %v3724_v53 = vld [vmem:[%s6147_s11 + $0xc0] sm:$0xff] }
0x14b0   : > { %4310 = vmatmul.mubr.msk.bf16.vlgmr.msra.gmra.mxu1 %vm552_vm1, %v3388_v0  ;;  %v5684_v50 = vadd.f32 %v3384_v3, %v5065_v15  ;;  %v4837_v15 = vld [vmem:[%s6146_s10 + $0x8] sm:$0xff]  }
0x14b1   : > { %3498 = vmatprep.mubr.bf16.mxu1 %v4944_v12  ;;  %v4836_v12 = vld [vmem:[%s6146_s10 + $0x48] sm:$0xff]  }
0x14b2   : > { %v3389_v23 = vpack.c.bf16 %v5684_v50, %v5684_v50  ;;  %4458 = vmatprep.subr.bf16.mxu0 %v4836_v12  ;;  %v3709_v0 = vld [vmem:[%s6147_s11 + $0x48] sm:$0xff] }
0x14b3   : > { %4459 = vmatpush3.bf16.msra.mxu0 %v4837_v15  ;;  %v3727_v15 = vld [vmem:[%s6147_s11 + $0xd8] sm:$0xff] }
0x14b4   : > { %4460 = vmatprep.subr.bf16.mxu0 %v4838_v58  ;;  %v3712_v58 = vld [vmem:[%s6147_s11 + $0x60] sm:$0xff] }
0x14b7   : > { %4461 = vmatpush3.bf16.msra.mxu0 %v4839_v4 }
0x14b8   : > { %4311 = vmatmul.mubr.msk.bf16.gmra.mxu1 %vm552_vm1, %v3389_v23 }
0x1570   : > { %v3490_v9 = vpop.f32.mrf.mxu1 }
0x1571   : > { %v3491_v40 = vadd.f32 %v3490_v9, %v3403_v39  ;;  %v3730_v9 = vld [vmem:[%s6147_s11 + $0xf0] sm:$0xff] }
0x1572   : > { %v3492_v11 = vpop.f32.mrf.mxu1 }
0x1573   : > { %v3493_v37 = vadd.f32 %v3492_v11, %v3407_v61  ;;  %v3507_v16 = vmax.f32 %v3491_v40, 0.0 }
0x1574   : > { %v3494_v14 = vpop.f32.mrf.mxu1 }
0x1575   : > { %v3495_v1 = vadd.f32 %v3494_v14, %v3403_v39  ;;  %v3508_v8 = vmax.f32 %v3493_v37, 0.0 }
0x1576   : > { %v3496_v25 = vpop.f32.mrf.mxu1 }
0x1577   : > { %v3497_v34 = vadd.f32 %v3496_v25, %v3407_v61  ;;  %v3509_v63 = vmax.f32 %v3495_v1, 0.0  ;;  %v3733_v25 = vld [vmem:[%s6147_s11 + $0x108] sm:$0xff] }
0x1578   : > { %v3500_v30 = vpop.f32.mrf.mxu1 }
0x1579   : > { %v3510_v6 = vmax.f32 %v3497_v34, 0.0  ;;  %v3513_v59 = vpack.c.bf16 %v3509_v63, %v3507_v16  ;;  %v3501_v19 = vadd.f32 %v3500_v30, %v3403_v39  ;;  %v3718_v34 = vld [vmem:[%s6147_s11 + $0x90] sm:$0xff] }
0x157a   : > { %v3502_v36 = vpop.f32.mrf.mxu1 }
0x157b   : > { %v3514_v10 = vpack.c.bf16 %v3510_v6, %v3508_v8  ;;  %v3503_v17 = vadd.f32 %v3502_v36, %v3407_v61  ;;  %v3511_v22 = vmax.f32 %v3501_v19, 0.0  ;;  %v3715_v61 = vld [vmem:[%s6147_s11 + $0x78] sm:$0xff] }
0x157c   : > { %v3504_v20 = vpop.f32.mrf.mxu1 }
0x157d   : > { %v3512_v18 = vmax.f32 %v3503_v17, 0.0  ;;  %3681 = vmatprep.mubr.bf16.mxu0 %v3514_v10  ;;  %v3515_v35 = vpack.c.bf16 %v3511_v22, %v3511_v22  ;;  %v3736_v10 = vld [vmem:[%s6147_s11 + $0x120] sm:$0xff]  ;;  %v3735_v17 = vld [vmem:[%s6147_s11 + $0x118] sm:$0xf] }
0x157e   : > { %v3505_v28 = vpop.f32.mrf.mxu1  ;;  %3682 = vmatmul.mubr.bf16.vlgmr.msra.gmra.mxu0 %v3513_v59 }
0x157f   : > { %v3516_v21 = vpack.c.bf16 %v3512_v18, %v3512_v18  ;;  %v3741_v18 = vld [vmem:[%s6147_s11 + $0x148] sm:$0xf]  ;;  %v3747_v28 = vld [vmem:[%s6147_s11 + $0x178] sm:$0xf] }
0x1581   : > { %3689 = vmatprep.mubr.bf16.mxu0 %v3516_v21 }
0x1586   : > { %3690 = vmatmul.mubr.bf16.gmra.mxu0 %v3515_v35 }
0x163e   : > { %v4462_v38 = vpop.f32.mrf.mxu0 }
0x1640   : > { %v4463_v42 = vpop.f32.mrf.mxu0 }
0x1641   : > { %v4464_v44 = vadd.f32 %v4463_v42, %v4462_v38  ;;  %v3739_v38 = vld [vmem:[%s6147_s11 + $0x138] sm:$0xff] }
0x1642   : > { %v4465_v46 = vpop.f32.mrf.mxu0 }
0x1643   : > { %v3684_v57 = vadd.f32 %v4464_v44, %v4312_v41 }
0x1644   : > { %v4466_v47 = vpop.f32.mrf.mxu0 }
0x1645   : > { %v5720_v26 = vadd.f32 %v3684_v57, %v5673_v2  ;;  %v4467_v4 = vadd.f32 %v4466_v47, %v4465_v46 }
0x1646   : > { %v4468_v27 = vpop.f32.mrf.mxu0 }
0x1647   : > { %v3754_v51 = vmul.f32 %v3706_v62, %v5720_v26  ;;  %v3748_v52 = vmul.f32 %v3700_v32, %v5720_v26  ;;  %v3769_v56 = vmul.f32 %v3721_v49, %v5720_v26  ;;  %v3751_v2 = vmul.f32 %v3703_v43, %v5720_v26 }
0x1648   : > { %v4469_v54 = vpop.f32.mrf.mxu0  ;;  %v3772_v33 = vmul.f32 %v3724_v53, %v5720_v26  ;;  %v3757_v12 = vmul.f32 %v3709_v0, %v5720_v26  ;;  %v3775_v29 = vmul.f32 %v3727_v15, %v5720_v26  ;;  %v3760_v7 = vmul.f32 %v3712_v58, %v5720_v26 }
0x1649   : > { %v3815_v31 = vsel %vm552_vm1, %v3754_v51, 0.0  ;;  %v3796_v55 = vsel %vm552_vm1, %v3748_v52, 0.0  ;;  %v3860_v23 = vsel %vm552_vm1, %v3769_v56, 0.0  ;;  %v3806_v24 = vsel %vm552_vm1, %v3751_v2, 0.0  ;;  %v3742_v51 = vld [vmem:[%s6147_s11 + $0x150] sm:$0xff]  ;;  %v3707_v52 = vld [vmem:[%s6147_s11 + $0x38] sm:$0xff] }
0x164a   : > { %v4471_v48 = vpop.f32.mrf.mxu0  ;;  %3816 = vadd.xlane.f32.xlu1 %v3815_v31  ;;  %3797 = vadd.xlane.f32.xlu0 %v3796_v55  ;;  %v4470_v5 = vadd.f32 %v4469_v54, %v4468_v27  ;;  %v3869_v13 = vsel %vm552_vm1, %v3772_v33, 0.0  ;;  %v3824_v45 = vsel %vm552_vm1, %v3757_v12, 0.0  ;;  %v3687_v39 = vadd.f32 %v4467_v4, %v4312_v41  ;;  %v3745_v2 = vld [vmem:[%s6147_s11 + $0x168] sm:$0xff]  ;;  %v3708_v4 = vld [vmem:[%s6147_s11 + $0x40] sm:$0xf] }
0x164b   : > { %v3878_v14 = vsel %vm552_vm1, %v3775_v29, 0.0  ;;  %v3833_v37 = vsel %vm552_vm1, %v3760_v7, 0.0  ;;  %v3778_v1 = vmul.f32 %v3730_v9, %v5720_v26  ;;  %v3763_v40 = vmul.f32 %v3715_v61, %v5720_v26  ;;  %v3710_v48 = vld [vmem:[%s6147_s11 + $0x50] sm:$0xff]  ;;  %v3713_v33 = vld [vmem:[%s6147_s11 + $0x68] sm:$0xff]  ;;  %v3719_v61 = vld [vmem:[%s6147_s11 + $0x98] sm:$0xff] }
0x164c   : > { %v4472_v3 = vpop.f32.mrf.mxu0  ;;  %v3692_v11 = vadd.f32 %v4470_v5, %v4312_v41  ;;  %v5771_v63 = vadd.f32 %v3687_v39, %v5676_v60  ;;  %v3781_v16 = vmul.f32 %v3733_v25, %v5720_v26  ;;  %v3766_v36 = vmul.f32 %v3718_v34, %v5720_v26  ;;  %v3701_v60 = vld [vmem:[%s6147_s11 + $0x8] sm:$0xff]  ;;  %v3704_v41 = vld [vmem:[%s6147_s11 + $0x20] sm:$0xff]  ;;  %v3714_v9 = vld [vmem:[%s6147_s11 + $0x70] sm:$0xf] }
0x164d   : > { %v3887_v8 = vsel %vm552_vm1, %v3778_v1, 0.0  ;;  %v3842_v6 = vsel %vm552_vm1, %v3763_v40, 0.0  ;;  %v3784_v59 = vmul.f32 %v3736_v10, %v5720_v26  ;;  %v3787_v32 = vmul.f32 %v3739_v38, %v5720_v26  ;;  %v3716_v5 = vld [vmem:[%s6147_s11 + $0x80] sm:$0xff]  ;;  %v3722_v40 = vld [vmem:[%s6147_s11 + $0xb0] sm:$0xff] }
0x164e   : > { %3861 = vadd.xlane.f32.xlu1 %v3860_v23  ;;  %3807 = vadd.xlane.f32.xlu0 %v3806_v24  ;;  %v5774_v30 = vadd.f32 %v3692_v11, %v5684_v50  ;;  %v3729_v50 = vld [vmem:[%s6147_s11 + $0xe8] sm:$0xf]  ;;  %v3749_v19 = vmul.f32 %v3701_v60, %v5771_v63  ;;  %v3896_v21 = vsel %vm552_vm1, %v3781_v16, 0.0  ;;  %v3851_v22 = vsel %vm552_vm1, %v3766_v36, 0.0  ;;  %v3702_v24 = vld [vmem:[%s6147_s11 + $0x10] sm:$0xf] }
0x164f   : > { %v3905_v47 = vsel %vm552_vm1, %v3784_v59, 0.0  ;;  %v3752_v27 = vmul.f32 %v3704_v41, %v5771_v63  ;;  %v3914_v54 = vsel %vm552_vm1, %v3787_v32, 0.0  ;;  %v3790_v55 = vmul.f32 %v3742_v51, %v5720_v26  ;;  %v3720_v1 = vld [vmem:[%s6147_s11 + $0xa0] sm:$0xf]  ;;  %v3726_v16 = vld [vmem:[%s6147_s11 + $0xd0] sm:$0xf] }
0x1650   : > { %v3777_v20 = vmul.f32 %v3729_v50, %v5774_v30  ;;  %v3783_v35 = vmul.f32 %v3735_v17, %v5774_v30  ;;  %v3789_v46 = vmul.f32 %v3741_v18, %v5774_v30  ;;  %v3795_v57 = vmul.f32 %v3747_v28, %v5774_v30  ;;  %v3725_v36 = vld [vmem:[%s6147_s11 + $0xc8] sm:$0xff]  ;;  %v3732_v59 = vld [vmem:[%s6147_s11 + $0x100] sm:$0xf] }
0x1651   : > { %v3799_v62 = vsel %vm552_vm1, %v3749_v19, 0.0  ;;  %v3809_v31 = vsel %vm552_vm1, %v3752_v27, 0.0  ;;  %v3755_v56 = vmul.f32 %v3707_v52, %v5771_v63  ;;  %v3923_v53 = vsel %vm552_vm1, %v3790_v55, 0.0  ;;  %v3728_v19 = vld [vmem:[%s6147_s11 + $0xe0] sm:$0xff] }
0x1652   : > { %3870 = vadd.xlane.f32.xlu1 %v3869_v13  ;;  %3825 = vadd.xlane.f32.xlu0 %v3824_v45  ;;  %v5811_v42 = vsel %vm3802_vm6, %v3777_v20, 0.0  ;;  %v5814_v44 = vsel %vm3802_vm6, %v3783_v35, 0.0  ;;  %v5823_v49 = vsel %vm3802_vm6, %v3789_v46, 0.0  ;;  %v5826_v43 = vsel %vm3802_vm6, %v3795_v57, 0.0  ;;  %v3731_v35 = vld [vmem:[%s6147_s11 + $0xf8] sm:$0xff] }
0x1653   : > { %v3818_v0 = vsel %vm552_vm1, %v3755_v56, 0.0  ;;  %v3793_v3 = vmul.f32 %v3745_v2, %v5720_v26  ;;  %v3758_v23 = vmul.f32 %v3710_v48, %v5771_v63  ;;  %v3750_v58 = vmul.f32 %v3702_v24, %v5774_v30  ;;  %v3740_v2 = vld [vmem:[%s6147_s11 + $0x140] sm:$0xff]  ;;  %v3746_v24 = vld [vmem:[%s6147_s11 + $0x170] sm:$0xff] }
0x1654   : > { %v3761_v26 = vmul.f32 %v3713_v33, %v5771_v63  ;;  %v3756_v29 = vmul.f32 %v3708_v4, %v5774_v30  ;;  %v3764_v7 = vmul.f32 %v3716_v5, %v5771_v63  ;;  %v3774_v50 = vmul.f32 %v3726_v16, %v5774_v30  ;;  %v3711_v4 = vld [vmem:[%s6147_s11 + $0x58] sm:$0xf] }
0x1655   : > { %v3932_v12 = vsel %vm552_vm1, %v3793_v3, 0.0  ;;  %v3827_v15 = vsel %vm552_vm1, %v3758_v23, 0.0  ;;  %v3803_v13 = vsel %vm3802_vm6, %v3750_v58, 0.0  ;;  %v3773_v17 = vmul.f32 %v3725_v36, %v5771_v63 }
0x1656   : > { %3879 = vadd.xlane.f32.xlu1 %v3878_v14  ;;  %3834 = vadd.xlane.f32.xlu0 %v3833_v37  ;;  %v3836_v45 = vsel %vm552_vm1, %v3761_v26, 0.0  ;;  %v3821_v39 = vsel %vm3802_vm6, %v3756_v29, 0.0  ;;  %v3845_v11 = vsel %vm552_vm1, %v3764_v7, 0.0  ;;  %v3762_v14 = vmul.f32 %v3714_v9, %v5774_v30  ;;  %v3723_v7 = vld [vmem:[%s6147_s11 + $0xb8] sm:$0xf] }
0x1657   : > { %v3767_v37 = vmul.f32 %v3719_v61, %v5771_v63  ;;  %v3875_v20 = vsel %vm3802_vm6, %v3774_v50, 0.0  ;;  %v3872_v18 = vsel %vm552_vm1, %v3773_v17, 0.0  ;;  %v3780_v28 = vmul.f32 %v3732_v59, %v5774_v30 }
0x1658   : > { %v3839_v25 = vsel %vm3802_vm6, %v3762_v14, 0.0  ;;  %v3779_v57 = vmul.f32 %v3731_v35, %v5771_v63  ;;  %v3771_v61 = vmul.f32 %v3723_v7, %v5774_v30 }
0x1659   : > { %v3854_v34 = vsel %vm552_vm1, %v3767_v37, 0.0  ;;  %v3893_v38 = vsel %vm3802_vm6, %v3780_v28, 0.0 }
0x165a   : > { %3888 = vadd.xlane.f32.xlu1 %v3887_v8  ;;  %3843 = vadd.xlane.f32.xlu0 %v3842_v6  ;;  %v3768_v8 = vmul.f32 %v3720_v1, %v5774_v30  ;;  %v3770_v6 = vmul.f32 %v3722_v40, %v5771_v63  ;;  %v3890_v27 = vsel %vm552_vm1, %v3779_v57, 0.0 }
0x165c   : > { %v3857_v10 = vsel %vm3802_vm6, %v3768_v8, 0.0  ;;  %v3863_v60 = vsel %vm552_vm1, %v3770_v6, 0.0 }
0x165e   : > { %3897 = vadd.xlane.f32.xlu1 %v3896_v21  ;;  %3852 = vadd.xlane.f32.xlu0 %v3851_v22  ;;  %v3776_v21 = vmul.f32 %v3728_v19, %v5771_v63  ;;  %v3738_v22 = vld [vmem:[%s6147_s11 + $0x130] sm:$0xf] }
0x165f   : > { %v3786_v46 = vmul.f32 %v3738_v22, %v5774_v30 }
0x1660   : > { %v3881_v41 = vsel %vm552_vm1, %v3776_v21, 0.0 }
0x1661   : > { %v3911_v32 = vsel %vm3802_vm6, %v3786_v46, 0.0 }
0x1662   : > { %3906 = vadd.xlane.f32.xlu1 %v3905_v47  ;;  %3800 = vadd.xlane.f32.xlu0 %v3799_v62  ;;  %v3744_v47 = vld [vmem:[%s6147_s11 + $0x160] sm:$0xf]  ;;  %v3734_v62 = vld [vmem:[%s6147_s11 + $0x110] sm:$0xff] }
0x1663   : > { %v3792_v51 = vmul.f32 %v3744_v47, %v5774_v30  ;;  %v3782_v52 = vmul.f32 %v3734_v62, %v5771_v63 }
0x1665   : > { %v3899_v55 = vsel %vm552_vm1, %v3782_v52, 0.0 }
0x1666   : > { %3915 = vadd.xlane.f32.xlu1 %v3914_v54  ;;  %3810 = vadd.xlane.f32.xlu0 %v3809_v31  ;;  %v3737_v54 = vld [vmem:[%s6147_s11 + $0x128] sm:$0xff]  ;;  %v3929_v31 = vsel %vm3802_vm6, %v3792_v51, 0.0 }
0x1667   : > { %v3785_v56 = vmul.f32 %v3737_v54, %v5771_v63 }
0x1669   : > { %v3908_v48 = vsel %vm552_vm1, %v3785_v56, 0.0 }
0x166a   : > { %3924 = vadd.xlane.f32.xlu1 %v3923_v53  ;;  %3819 = vadd.xlane.f32.xlu0 %v3818_v0  ;;  %v3788_v53 = vmul.f32 %v3740_v2, %v5771_v63  ;;  %v3743_v0 = vld [vmem:[%s6147_s11 + $0x158] sm:$0xff] }
0x166b   : > { %v3791_v23 = vmul.f32 %v3743_v0, %v5771_v63 }
0x166c   : > { %v3917_v3 = vsel %vm552_vm1, %v3788_v53, 0.0 }
0x166d   : > { %v3926_v33 = vsel %vm552_vm1, %v3791_v23, 0.0  ;;  %v4086_v23 = vld [vmem:[%s6148_s12] sm:$0x1] }
0x166e   : > { %3933 = vadd.xlane.f32.xlu1 %v3932_v12  ;;  %3828 = vadd.xlane.f32.xlu0 %v3827_v15  ;;  %v3794_v12 = vmul.f32 %v3746_v24, %v5771_v63  ;;  %v3705_v15 = vld [vmem:[%s6147_s11 + $0x28] sm:$0xf] }
0x166f   : > { %v3753_v26 = vmul.f32 %v3705_v15, %v5774_v30  ;;  %v3717_v63 = vld [vmem:[%s6147_s11 + $0x88] sm:$0xf] }
0x1670   : > { %v3935_v58 = vsel %vm552_vm1, %v3794_v12, 0.0  ;;  %v3765_v29 = vmul.f32 %v3717_v63, %v5774_v30 }
0x1671   : > { %v3812_v5 = vsel %vm3802_vm6, %v3753_v26, 0.0 }
0x1672   : > { %3804 = vadd.xlane.f32.xlu1 %v3803_v13  ;;  %3837 = vadd.xlane.f32.xlu0 %v3836_v45  ;;  %v3759_v13 = vmul.f32 %v3711_v4, %v5774_v30  ;;  %v3848_v9 = vsel %vm3802_vm6, %v3765_v29, 0.0  ;;  %v4088_v29 = vld [vmem:[%s6148_s12 + $0x2] sm:$0x1] }
0x1674   : > { %v3830_v45 = vsel %vm3802_vm6, %v3759_v13, 0.0 }
0x1676   : > { %3822 = vadd.xlane.f32.xlu1 %v3821_v39  ;;  %3846 = vadd.xlane.f32.xlu0 %v3845_v11  ;;  %v3866_v39 = vsel %vm3802_vm6, %v3771_v61, 0.0 }
0x167a   : > { %3840 = vadd.xlane.f32.xlu1 %v3839_v25  ;;  %3855 = vadd.xlane.f32.xlu0 %v3854_v34 }
0x167e   : > { %3858 = vadd.xlane.f32.xlu1 %v3857_v10  ;;  %3864 = vadd.xlane.f32.xlu0 %v3863_v60 }
0x1682   : > { %3876 = vadd.xlane.f32.xlu1 %v3875_v20  ;;  %3873 = vadd.xlane.f32.xlu0 %v3872_v18 }
0x1686   : > { %3894 = vadd.xlane.f32.xlu1 %v3893_v38  ;;  %3882 = vadd.xlane.f32.xlu0 %v3881_v41 }
0x168a   : > { %3912 = vadd.xlane.f32.xlu1 %v3911_v32  ;;  %3891 = vadd.xlane.f32.xlu0 %v3890_v27 }
0x168e   : > { %3930 = vadd.xlane.f32.xlu1 %v3929_v31  ;;  %3900 = vadd.xlane.f32.xlu0 %v3899_v55 }
0x1692   : > { %3909 = vadd.xlane.f32.xlu0 %v3908_v48 }
0x1696   : > { %3918 = vadd.xlane.f32.xlu0 %v3917_v3 }
0x169a   : > { %3927 = vadd.xlane.f32.xlu0 %v3926_v33 }
0x169e   : > { %3936 = vadd.xlane.f32.xlu0 %v3935_v58 }
0x16a2   : > { %3813 = vadd.xlane.f32.xlu0 %v3812_v5 }
0x16a6   : > { %3831 = vadd.xlane.f32.xlu0 %v3830_v45 }
0x16aa   : > { %3849 = vadd.xlane.f32.xlu0 %v3848_v9 }
0x16ae   : > { %3867 = vadd.xlane.f32.xlu0 %v3866_v39 }
0x16b2   : > { %3885 = vadd.xlane.f32.xlu0 %v5811_v42 }
0x16b6   : > { %3903 = vadd.xlane.f32.xlu0 %v5814_v44 }
0x16ba   : > { %3921 = vadd.xlane.f32.xlu0 %v5823_v49 }
0x16be   : > { %3939 = vadd.xlane.f32.xlu0 %v5826_v43 }
0x16d3   : > { %v3817_v11 = vpop.xlane.xlu1 %3816  ;;  %v3798_v14 = vpop.xlane.xlu0 %3797 }
0x16d7   : > { %v5974_v37 = vpop.xlane.xlu1 %3861  ;;  %v5976_v1 = vpop.xlane.xlu0 %3807 }
0x16db   : > { %v3871_v40 = vpop.xlane.xlu1 %3870  ;;  %v5978_v30 = vpop.xlane.xlu0 %3825 }
0x16df   : > { %v5980_v25 = vpop.xlane.xlu1 %3879  ;;  %v3835_v34 = vpop.xlane.xlu0 %3834 }
0x16e3   : > { %v5982_v8 = vpop.xlane.xlu1 %3888  ;;  %v5984_v42 = vpop.xlane.xlu0 %3843 }
0x16e7   : > { %v5986_v44 = vpop.xlane.xlu1 %3897  ;;  %v3853_v49 = vpop.xlane.xlu0 %3852 }
0x16eb   : > { %v5988_v43 = vpop.xlane.xlu1 %3906  ;;  %v3801_v6 = vpop.xlane.xlu0 %3800 }
0x16ec   : > { %v3941_v59 = vadd.f32 %v3801_v6, %v3798_v14 }
0x16ef   : > { %v5990_v16 = vpop.xlane.xlu1 %3915  ;;  %v5992_v36 = vpop.xlane.xlu0 %3810 }
0x16f3   : > { %v5994_v10 = vpop.xlane.xlu1 %3924  ;;  %v3820_v60 = vpop.xlane.xlu0 %3819 }
0x16f4   : > { %v3960_v21 = vadd.f32 %v3820_v60, %v3817_v11 }
0x16f7   : > { %v5996_v50 = vpop.xlane.xlu1 %3933  ;;  %v5998_v17 = vpop.xlane.xlu0 %3828 }
0x16fb   : > { %v3805_v19 = vpop.xlane.xlu1 %3804  ;;  %v3838_v20 = vpop.xlane.xlu0 %3837 }
0x16fc   : > { %v3943_v18 = vsel %vm3942_vm7, %v3805_v19, 0.0  ;;  %v3978_v62 = vadd.f32 %v3838_v20, %v3835_v34 }
0x16fd   : > { %v3944_v28 = vadd.f32 %v3943_v18, %v3941_v59  ;;  %v4090_v59 = vld [vmem:[%s6148_s12 + $0x4] sm:$0x1] }
0x16ff   : > { %v3945_v22 = vrot.slane %v3944_v28, 4  ;;  %v3823_v35 = vpop.xlane.xlu1 %3822  ;;  %v6001_v38 = vpop.xlane.xlu0 %3846 }
0x1700   : > { %v3961_v41 = vsel %vm3942_vm7, %v3823_v35, 0.0 }
0x1701   : > { %v3946_v46 = vadd.f32 %v3945_v22, %v3944_v28  ;;  %v3962_v57 = vadd.f32 %v3961_v41, %v3960_v21  ;;  %v4092_v41 = vld [vmem:[%s6148_s12 + $0x6] sm:$0x1] }
0x1703   : > { %v3947_v47 = vrot.slane %v3946_v46, 2  ;;  %v3963_v32 = vrot.slane %v3962_v57, 4  ;;  %v3841_v27 = vpop.xlane.xlu1 %3840  ;;  %v3856_v51 = vpop.xlane.xlu0 %3855 }
0x1704   : > { %v3979_v52 = vsel %vm3942_vm7, %v3841_v27, 0.0  ;;  %v3996_v53 = vadd.f32 %v3856_v51, %v3853_v49 }
0x1705   : > { %v3948_v54 = vadd.f32 %v3947_v47, %v3946_v46  ;;  %v3964_v31 = vadd.f32 %v3963_v32, %v3962_v57  ;;  %v3980_v55 = vadd.f32 %v3979_v52, %v3978_v62 }
0x1707   : > { %v3949_v56 = vrot.slane %v3948_v54, 1  ;;  %v3965_v2 = vrot.slane %v3964_v31, 2  ;;  %v3981_v48 = vrot.slane %v3980_v55, 4  ;;  %v3859_v0 = vpop.xlane.xlu1 %3858  ;;  %v6006_v3 = vpop.xlane.xlu0 %3864 }
0x1708   : > { %v3997_v24 = vsel %vm3942_vm7, %v3859_v0, 0.0 }
0x1709   : > { %v3950_v33 = vadd.f32 %v3949_v56, %v3948_v54  ;;  %v3966_v12 = vadd.f32 %v3965_v2, %v3964_v31  ;;  %v3982_v15 = vadd.f32 %v3981_v48, %v3980_v55  ;;  %v3998_v58 = vadd.f32 %v3997_v24, %v3996_v53  ;;  %v4094_v55 = vld [vmem:[%s6148_s12 + $0x8] sm:$0x1] }
0x170b   : > { %v4102_v26 = vadd.f32 %v4086_v23, %v3950_v33  ;;  %v3967_v4 = vrot.slane %v3966_v12, 1  ;;  %v3983_v5 = vrot.slane %v3982_v15, 2  ;;  %v3999_v13 = vrot.slane %v3998_v58, 4  ;;  %v3877_v63 = vpop.xlane.xlu1 %3876  ;;  %v3874_v45 = vpop.xlane.xlu0 %3873 }
0x170c   : > { %v4015_v7 = vsel %vm3942_vm7, %v3877_v63, 0.0  ;;  %v4014_v9 = vadd.f32 %v3874_v45, %v3871_v40 }
0x170d   : > { %4119 = vst.msk [vmem:[%s6015_s26] sm:$0x1] %vm4118_vm8, %v4102_v26  ;;  %v3968_v61 = vadd.f32 %v3967_v4, %v3966_v12  ;;  %v3984_v39 = vadd.f32 %v3983_v5, %v3982_v15  ;;  %v4000_v11 = vadd.f32 %v3999_v13, %v3998_v58  ;;  %v4096_v4 = vld [vmem:[%s6148_s12 + $0xa] sm:$0x1] }
0x170e   : > { %v4016_v14 = vadd.f32 %v4015_v7, %v4014_v9 }
0x170f   : > { %v4104_v34 = vadd.f32 %v4088_v29, %v3968_v61  ;;  %v3985_v49 = vrot.slane %v3984_v39, 1  ;;  %v4001_v6 = vrot.slane %v4000_v11, 2  ;;  %v6023_v60 = vpop.xlane.xlu0 %3882  ;;  %v3895_v28 = vpop.xlane.xlu1 %3894 }
0x1710   : > { %v4017_v19 = vrot.slane %v4016_v14, 4  ;;  %v4033_v62 = vsel %vm3942_vm7, %v3895_v28, 0.0 }
0x1711   : > { %4121 = vst.msk [vmem:[%s6015_s26 + $0x2] sm:$0x1] %vm4118_vm8, %v4104_v34  ;;  %v3986_v40 = vadd.f32 %v3985_v49, %v3984_v39  ;;  %v4002_v20 = vadd.f32 %v4001_v6, %v4000_v11  ;;  %v4098_v49 = vld [vmem:[%s6148_s12 + $0xc] sm:$0x1] }
0x1712   : > { %v4018_v18 = vadd.f32 %v4017_v19, %v4016_v14 }
0x1713   : > { %v4106_v21 = vadd.f32 %v4090_v59, %v3986_v40  ;;  %v4003_v22 = vrot.slane %v4002_v20, 1  ;;  %v3892_v35 = vpop.xlane.xlu0 %3891  ;;  %v3913_v56 = vpop.xlane.xlu1 %3912 }
0x1714   : > { %v4019_v46 = vrot.slane %v4018_v18, 2  ;;  %v4032_v57 = vadd.f32 %v3892_v35, %v5982_v8  ;;  %v4051_v24 = vsel %vm3942_vm7, %v3913_v56, 0.0  ;;  %v4005_v56 = vadd.f32 %v6006_v3, %v5974_v37 }
0x1715   : > { %4123 = vst.msk [vmem:[%s6015_s26 + $0x4] sm:$0x1] %vm4118_vm8, %v4106_v21  ;;  %v4004_v47 = vadd.f32 %v4003_v22, %v4002_v20  ;;  %v3969_v22 = vadd.f32 %v5998_v17, %v5978_v30 }
0x1716   : > { %v4020_v32 = vadd.f32 %v4019_v46, %v4018_v18  ;;  %v4034_v27 = vadd.f32 %v4033_v62, %v4032_v57 }
0x1717   : > { %v4108_v51 = vadd.f32 %v4092_v41, %v4004_v47  ;;  %v6037_v52 = vpop.xlane.xlu0 %3900  ;;  %v3931_v13 = vpop.xlane.xlu1 %3930 }
0x1718   : > { %v4021_v54 = vrot.slane %v4020_v32, 1  ;;  %v4035_v31 = vrot.slane %v4034_v27, 4  ;;  %v4069_v9 = vsel %vm3942_vm7, %v3931_v13, 0.0  ;;  %v4089_v13 = vld [vmem:[%s6148_s12 + $0x3] sm:$0x1] }
0x1719   : > { %4125 = vst.msk [vmem:[%s6015_s26 + $0x6] sm:$0x1] %vm4118_vm8, %v4108_v51 }
0x171a   : > { %v4022_v8 = vadd.f32 %v4021_v54, %v4020_v32  ;;  %v4036_v2 = vadd.f32 %v4035_v31, %v4034_v27  ;;  %v3987_v32 = vadd.f32 %v6001_v38, %v5984_v42  ;;  %v4087_v42 = vld [vmem:[%s6148_s12 + $0x1] sm:$0x1] }
0x171b   : > { %v3910_v48 = vpop.xlane.xlu0 %3909 }
0x171c   : > { %v4110_v53 = vadd.f32 %v4094_v55, %v4022_v8  ;;  %v4037_v0 = vrot.slane %v4036_v2, 2  ;;  %v4050_v23 = vadd.f32 %v3910_v48, %v5988_v43 }
0x171e   : > { %4127 = vst.msk [vmem:[%s6015_s26 + $0x8] sm:$0x1] %vm4118_vm8, %v4110_v53  ;;  %v4038_v33 = vadd.f32 %v4037_v0, %v4036_v2  ;;  %v4052_v12 = vadd.f32 %v4051_v24, %v4050_v23 }
0x171f   : > { %v6048_v15 = vpop.xlane.xlu0 %3918 }
0x1720   : > { %v4039_v58 = vrot.slane %v4038_v33, 1  ;;  %v4053_v26 = vrot.slane %v4052_v12, 4 }
0x1722   : > { %v4040_v5 = vadd.f32 %v4039_v58, %v4038_v33  ;;  %v4054_v63 = vadd.f32 %v4053_v26, %v4052_v12  ;;  %v4023_v58 = vadd.f32 %v6023_v60, %v5980_v25  ;;  %v4041_v25 = vadd.f32 %v6037_v52, %v5986_v44 }
0x1723   : > { %v3928_v45 = vpop.xlane.xlu0 %3927  ;;  %v4059_v44 = vadd.f32 %v6048_v15, %v5990_v16 }
0x1724   : > { %v4112_v43 = vadd.f32 %v4096_v4, %v4040_v5  ;;  %v4055_v29 = vrot.slane %v4054_v63, 2  ;;  %v4068_v7 = vadd.f32 %v3928_v45, %v5994_v10  ;;  %v3951_v10 = vadd.f32 %v5992_v36, %v5976_v1  ;;  %v4100_v1 = vld [vmem:[%s6148_s12 + $0xe] sm:$0x1] }
0x1726   : > { %4129 = vst.msk [vmem:[%s6015_s26 + $0xa] sm:$0x1] %vm4118_vm8, %v4112_v43  ;;  %v4056_v61 = vadd.f32 %v4055_v29, %v4054_v63  ;;  %v4070_v39 = vadd.f32 %v4069_v9, %v4068_v7 }
0x1727   : > { %v6057_v11 = vpop.xlane.xlu0 %3936 }
0x1728   : > { %v4057_v14 = vrot.slane %v4056_v61, 1  ;;  %v4071_v34 = vrot.slane %v4070_v39, 4  ;;  %v4077_v16 = vadd.f32 %v6057_v11, %v5996_v50 }
0x172a   : > { %v4058_v6 = vadd.f32 %v4057_v14, %v4056_v61  ;;  %v4072_v59 = vadd.f32 %v4071_v34, %v4070_v39  ;;  %v4091_v34 = vld [vmem:[%s6148_s12 + $0x5] sm:$0x1] }
0x172b   : > { %v3814_v19 = vpop.xlane.xlu0 %3813 }
0x172c   : > { %v4114_v40 = vadd.f32 %v4098_v49, %v4058_v6  ;;  %v4073_v20 = vrot.slane %v4072_v59, 2  ;;  %v3952_v18 = vsel %vm3942_vm7, %v3814_v19, 0.0 }
0x172d   : > { %v3953_v28 = vadd.f32 %v3952_v18, %v3951_v10 }
0x172e   : > { %4131 = vst.msk [vmem:[%s6015_s26 + $0xc] sm:$0x1] %vm4118_vm8, %v4114_v40  ;;  %v4074_v21 = vadd.f32 %v4073_v20, %v4072_v59 }
0x172f   : > { %v3954_v35 = vrot.slane %v3953_v28, 4  ;;  %v3832_v41 = vpop.xlane.xlu0 %3831 }
0x1730   : > { %v4075_v46 = vrot.slane %v4074_v21, 1  ;;  %v3970_v57 = vsel %vm3942_vm7, %v3832_v41, 0.0 }
0x1731   : > { %v3955_v36 = vadd.f32 %v3954_v35, %v3953_v28  ;;  %v3971_v47 = vadd.f32 %v3970_v57, %v3969_v22 }
0x1732   : > { %v4076_v62 = vadd.f32 %v4075_v46, %v4074_v21  ;;  %v4093_v21 = vld [vmem:[%s6148_s12 + $0x7] sm:$0x1] }
0x1733   : > { %v3956_v27 = vrot.slane %v3955_v36, 2  ;;  %v3972_v51 = vrot.slane %v3971_v47, 4  ;;  %v3850_v54 = vpop.xlane.xlu0 %3849 }
0x1734   : > { %v4116_v30 = vadd.f32 %v4100_v1, %v4076_v62  ;;  %v3988_v17 = vsel %vm3942_vm7, %v3850_v54, 0.0 }
0x1735   : > { %v3957_v31 = vadd.f32 %v3956_v27, %v3955_v36  ;;  %v3973_v55 = vadd.f32 %v3972_v51, %v3971_v47  ;;  %v3989_v8 = vadd.f32 %v3988_v17, %v3987_v32  ;;  %v4095_v32 = vld [vmem:[%s6148_s12 + $0x9] sm:$0x1] }
0x1736   : > { %4133 = vst.msk [vmem:[%s6015_s26 + $0xe] sm:$0x1] %vm4118_vm8, %v4116_v30 }
0x1737   : > { %v3958_v2 = vrot.slane %v3957_v31, 1  ;;  %v3974_v48 = vrot.slane %v3973_v55, 2  ;;  %v3990_v53 = vrot.slane %v3989_v8, 4  ;;  %v3868_v0 = vpop.xlane.xlu0 %3867 }
0x1738   : > { %v4006_v38 = vsel %vm3942_vm7, %v3868_v0, 0.0 }
0x1739   : > { %v3959_v23 = vadd.f32 %v3958_v2, %v3957_v31  ;;  %v3975_v24 = vadd.f32 %v3974_v48, %v3973_v55  ;;  %v3991_v33 = vadd.f32 %v3990_v53, %v3989_v8  ;;  %v4007_v12 = vadd.f32 %v4006_v38, %v4005_v56  ;;  %v4097_v8 = vld [vmem:[%s6148_s12 + $0xb] sm:$0x1]  ;;  %v4099_v38 = vld [vmem:[%s6148_s12 + $0xd] sm:$0x1] }
0x173b   : > { %v4103_v26 = vadd.f32 %v4087_v42, %v3959_v23  ;;  %v3976_v37 = vrot.slane %v3975_v24, 1  ;;  %v3992_v3 = vrot.slane %v3991_v33, 2  ;;  %v4008_v4 = vrot.slane %v4007_v12, 4  ;;  %v3886_v5 = vpop.xlane.xlu0 %3885 }
0x173c   : > { %v4024_v63 = vsel %vm3942_vm7, %v3886_v5, 0.0 }
0x173d   : > { %4120 = vst.msk [vmem:[%s6015_s26 + $0x1] sm:$0x1] %vm4118_vm8, %v4103_v26  ;;  %v3977_v45 = vadd.f32 %v3976_v37, %v3975_v24  ;;  %v3993_v43 = vadd.f32 %v3992_v3, %v3991_v33  ;;  %v4009_v29 = vadd.f32 %v4008_v4, %v4007_v12  ;;  %v4025_v7 = vadd.f32 %v4024_v63, %v4023_v58  ;;  %v4101_v58 = vld [vmem:[%s6148_s12 + $0xf] sm:$0x1] }
0x173f   : > { %v4105_v60 = vadd.f32 %v4089_v13, %v3977_v45  ;;  %v3994_v9 = vrot.slane %v3993_v43, 1  ;;  %v4010_v61 = vrot.slane %v4009_v29, 2  ;;  %v4026_v39 = vrot.slane %v4025_v7, 4  ;;  %v3904_v14 = vpop.xlane.xlu0 %3903 }
0x1740   : > { %v4042_v49 = vsel %vm3942_vm7, %v3904_v14, 0.0 }
0x1741   : > { %4122 = vst.msk [vmem:[%s6015_s26 + $0x3] sm:$0x1] %vm4118_vm8, %v4105_v60  ;;  %v3995_v6 = vadd.f32 %v3994_v9, %v3993_v43  ;;  %v4011_v59 = vadd.f32 %v4010_v61, %v4009_v29  ;;  %v4027_v10 = vadd.f32 %v4026_v39, %v4025_v7  ;;  %v4043_v19 = vadd.f32 %v4042_v49, %v4041_v25 }
0x1743   : > { %v4107_v52 = vadd.f32 %v4091_v34, %v3995_v6  ;;  %v4012_v40 = vrot.slane %v4011_v59, 1  ;;  %v4028_v20 = vrot.slane %v4027_v10, 2  ;;  %v4044_v18 = vrot.slane %v4043_v19, 4  ;;  %v3922_v28 = vpop.xlane.xlu0 %3921 }
0x1744   : > { %v4060_v22 = vsel %vm3942_vm7, %v3922_v28, 0.0 }
0x1745   : > { %4124 = vst.msk [vmem:[%s6015_s26 + $0x5] sm:$0x1] %vm4118_vm8, %v4107_v52  ;;  %v4013_v35 = vadd.f32 %v4012_v40, %v4011_v59  ;;  %v4029_v41 = vadd.f32 %v4028_v20, %v4027_v10  ;;  %v4045_v46 = vadd.f32 %v4044_v18, %v4043_v19  ;;  %v4061_v57 = vadd.f32 %v4060_v22, %v4059_v44 }
0x1747   : > { %v4109_v15 = vadd.f32 %v4093_v21, %v4013_v35  ;;  %v4030_v1 = vrot.slane %v4029_v41, 1  ;;  %v4046_v36 = vrot.slane %v4045_v46, 2  ;;  %v4062_v47 = vrot.slane %v4061_v57, 4  ;;  %v3940_v62 = vpop.xlane.xlu0 %3939 }
0x1748   : > { %v4078_v27 = vsel %vm3942_vm7, %v3940_v62, 0.0 }
0x1749   : > { %4126 = vst.msk [vmem:[%s6015_s26 + $0x7] sm:$0x1] %vm4118_vm8, %v4109_v15  ;;  %v4031_v51 = vadd.f32 %v4030_v1, %v4029_v41  ;;  %v4047_v54 = vadd.f32 %v4046_v36, %v4045_v46  ;;  %v4063_v30 = vadd.f32 %v4062_v47, %v4061_v57  ;;  %v4079_v17 = vadd.f32 %v4078_v27, %v4077_v16 }
0x174b   : > { %v4111_v50 = vadd.f32 %v4095_v32, %v4031_v51  ;;  %v4048_v11 = vrot.slane %v4047_v54, 1  ;;  %v4064_v31 = vrot.slane %v4063_v30, 2  ;;  %v4080_v55 = vrot.slane %v4079_v17, 4 }
0x174d   : > { %4128 = vst.msk [vmem:[%s6015_s26 + $0x9] sm:$0x1] %vm4118_vm8, %v4111_v50  ;;  %v4049_v56 = vadd.f32 %v4048_v11, %v4047_v54  ;;  %v4065_v2 = vadd.f32 %v4064_v31, %v4063_v30  ;;  %v4081_v48 = vadd.f32 %v4080_v55, %v4079_v17 }
0x174f   : > { %v4113_v53 = vadd.f32 %v4097_v8, %v4049_v56  ;;  %v4066_v0 = vrot.slane %v4065_v2, 1  ;;  %v4082_v42 = vrot.slane %v4081_v48, 2 }
0x1751   : > { %4130 = vst.msk [vmem:[%s6015_s26 + $0xb] sm:$0x1] %vm4118_vm8, %v4113_v53  ;;  %v4067_v23 = vadd.f32 %v4066_v0, %v4065_v2  ;;  %v4083_v24 = vadd.f32 %v4082_v42, %v4081_v48 }
0x1753   : > { %v4115_v33 = vadd.f32 %v4099_v38, %v4067_v23  ;;  %v4084_v12 = vrot.slane %v4083_v24, 1 }
0x1755   : > { %4132 = vst.msk [vmem:[%s6015_s26 + $0xd] sm:$0x1] %vm4118_vm8, %v4115_v33  ;;  %v4085_v26 = vadd.f32 %v4084_v12, %v4083_v24 }
0x1757   : > { %v4117_v37 = vadd.f32 %v4101_v58, %v4085_v26 }
0x1759   : > { %4134 = vst.msk [vmem:[%s6015_s26 + $0xf] sm:$0x1] %vm4118_vm8, %v4117_v37 }
0x175a PF: > { %s23_s25 = sadd.s32 1, %s4942_s25  }
0x175b   : > { %p20_p4 = scmp.ge.s32.totalorder %s23_s25, 4  }
0x175d   :  { %22 = sbr.rel (!%p20_p4) target bundleno = 1 (0x1), region = 102 }

</bundles_post_ra>
